<compile_context>
chip_gen: v7x
topology: tpu7x:2x2x1
jax: 0.10.0
libtpu: 0.0.40
codegen_flags: <defaults>
</compile_context>

<pallas_src>
import functools

import jax
import jax.numpy as jnp
from jax.experimental import pallas as pl
from jax.experimental.pallas import tpu as pltpu

_LANE = 128


def _round_up(x, m):
    return ((x + m - 1) // m) * m


def _pad_last(a, n):
    """Zero-pad the last dim of `a` up to n columns."""
    pad = n - a.shape[-1]
    if pad <= 0:
        return a
    cfg = [(0, 0)] * (a.ndim - 1) + [(0, pad)]
    return jnp.pad(a, cfg)


def _tpu_budgets():
    """(per-block byte budget for kernel-1 tiles, vmem_limit_bytes, is_v7x)."""
    try:
        kind = jax.devices()[0].device_kind.lower()
    except Exception:
        kind = ""
    if "v5" in kind or "v6" in kind:
        return 28 << 20, 96 << 20, False     # 128 MiB VMEM parts: go big
    if "7" in kind:
        return 12 << 20, 48 << 20, True      # v7x: 64 MiB VMEM, 2 TensorCores
    return 12 << 20, 48 << 20, False         # unknown generation: stay conservative


def _choose_tb(b, per_b_bytes, budget, want_multi_tile):
    """Pick the batch tile.  Prefers a divisor of B near the VMEM cap; otherwise pads B
    (padded rows are masked out of the BN stats inside the kernel)."""
    cap = max(1, min(b, 64, budget // max(per_b_bytes, 1)))
    if want_multi_tile and b >= 2:
        cap = min(cap, (b + 1) // 2)          # keep >= 2 grid steps for the 2 TCs (v7x)
    for cand in range(cap, 0, -1):            # largest divisor within 2x of the cap
        if b % cand == 0 and cand * 2 > cap:
            return cand, b
    return cap, _round_up(b, cap)             # awkward/prime B: pad instead of tb=1


# ----------------------------------------------------------------------------
# Kernel 1: fused spatial+temporal squeeze, native-layout streaming.
#   mean over T / mean over V  ->  two wide MXU "pooling" matmuls (bf16, f32 acc)
#   1x1 conv (channel contraction) -> one dot per branch per grid step
#   emits packed pre-BN activations (bf16) + per-tile BN partial statistics (f32)
# ----------------------------------------------------------------------------
def _squeeze_kernel(x_ref, psp_ref, ptp_ref, ws_ref, bs_ref, wt_ref, bt_ref,
                    zs_ref, zt_ref, ss_ref, st_ref, *, n_valid, padded):
    f32 = jnp.float32
    c, _ = ws_ref.shape
    v = psp_ref.shape[1]
    t = ptp_ref.shape[1]
    tb = x_ref.shape[0] // c

    # ---- stage 1: single pass over the big block, two wide MXU reductions ---------
    xb = x_ref[...].astype(jnp.bfloat16)                                 # [tb*C, T*V]
    s_sp = jnp.dot(xb, psp_ref[...], preferred_element_type=f32)         # [tb*C, V] = sum over T
    s_tp = jnp.dot(xb, ptp_ref[...], preferred_element_type=f32)         # [tb*C, T] = sum over V

    # ---- stage 2: regroup (b,c)-rows -> (b,slot)-rows with layout-safe slices, then
    #      ONE 1x1-conv channel-contraction dot per branch (stage 2 is ~0.2% of the FLOPs).
    def regroup(s):
        parts = [s[i * c:(i + 1) * c, :].T for i in range(tb)]           # each [slot, C]
        return parts[0] if tb == 1 else jnp.concatenate(parts, axis=0)   # [tb*slot, C]

    z_sp = (jnp.dot(regroup(s_sp), ws_ref[...], preferred_element_type=f32) * (1.0 / t)
            + bs_ref[...])                                               # [tb*V, hs]
    z_tp = (jnp.dot(regroup(s_tp), wt_ref[...], preferred_element_type=f32) * (1.0 / v)
            + bt_ref[...])                                               # [tb*T, ht]

    zs_ref[...] = z_sp.astype(zs_ref.dtype)                              # bf16, packed rows (b, v)
    zt_ref[...] = z_tp.astype(zt_ref.dtype)                              # bf16, packed rows (b, t)

    # ---- per-tile BatchNorm partials (padded batch rows masked out) ----------------
    if padded:
        pid = pl.program_id(0)
        msk_s, msk_t = [], []
        for b in range(tb):
            wb = jnp.where(pid * tb + b < n_valid, 1.0, 0.0).astype(f32)
            msk_s.append(jnp.full((v, 1), 1.0, f32) * wb)
            msk_t.append(jnp.full((t, 1), 1.0, f32) * wb)
        zs_m = z_sp * (msk_s[0] if tb == 1 else jnp.concatenate(msk_s, axis=0))
        zt_m = z_tp * (msk_t[0] if tb == 1 else jnp.concatenate(msk_t, axis=0))
    else:
        zs_m, zt_m = z_sp, z_tp

    ss_ref[...] = jnp.concatenate(
        [jnp.sum(zs_m, axis=0, keepdims=True),
         jnp.sum(zs_m * z_sp, axis=0, keepdims=True)], axis=0)           # [2, hs]
    st_ref[...] = jnp.concatenate(
        [jnp.sum(zt_m, axis=0, keepdims=True),
         jnp.sum(zt_m * z_tp, axis=0, keepdims=True)], axis=0)           # [2, ht]


def _fused_squeeze(x3, psp, ptp, ws, bs, wt, bt, *, n_valid, padded, vmem_limit):
    nb, tbc, tv = x3.shape
    c, hs = ws.shape
    ht = wt.shape[1]
    v = psp.shape[1]
    t = ptp.shape[1]
    tb = tbc // c
    kern = functools.partial(_squeeze_kernel, n_valid=n_valid, padded=padded)
    return pl.pallas_call(
        kern,
        grid=(nb,),
        out_shape=(jax.ShapeDtypeStruct((nb, tb * v, hs), jnp.bfloat16),   # pre-BN spatial
                   jax.ShapeDtypeStruct((nb, tb * t, ht), jnp.bfloat16),   # pre-BN temporal
                   jax.ShapeDtypeStruct((nb, 2, hs), jnp.float32),         # (sum, sum^2) spatial
                   jax.ShapeDtypeStruct((nb, 2, ht), jnp.float32)),        # (sum, sum^2) temporal
        in_specs=[pl.BlockSpec((None, tbc, tv), lambda i: (i, 0, 0)),      # native-layout stream
                  pl.BlockSpec((tv, v), lambda i: (0, 0)),                 # pooling matrix (sum T)
                  pl.BlockSpec((tv, t), lambda i: (0, 0)),                 # pooling matrix (sum V)
                  pl.BlockSpec((c, hs), lambda i: (0, 0)),
                  pl.BlockSpec((1, hs), lambda i: (0, 0)),
                  pl.BlockSpec((c, ht), lambda i: (0, 0)),
                  pl.BlockSpec((1, ht), lambda i: (0, 0))],
        out_specs=(pl.BlockSpec((None, tb * v, hs), lambda i: (i, 0, 0)),
                   pl.BlockSpec((None, tb * t, ht), lambda i: (i, 0, 0)),
                   pl.BlockSpec((None, 2, hs), lambda i: (i, 0, 0)),
                   pl.BlockSpec((None, 2, ht), lambda i: (i, 0, 0))),
        compiler_params=pltpu.CompilerParams(dimension_semantics=("parallel",),
                                             vmem_limit_bytes=vmem_limit),
    )(x3, psp, ptp, ws, bs, wt, bt)


# ----------------------------------------------------------------------------
# Kernel 2: CL_Module2, one grid step per branch (spatial / temporal).
#   BN finalize (per-column affine) + ReLU + embed + prototype math + InfoNCE losses.
#   Class axis padded to Kp (multiple of 128) so all concats/slices are lane-aligned.
# ----------------------------------------------------------------------------
def _cl_kernel(z_ref, sc_ref, sh_ref, we_ref, be_ref, gp_ref, lbl_ref, logit_ref,
               loss_ref, gp_out_ref, *, num_classes, alp, tmp, mom,
               pred_threshold, use_p_map):
    f32 = jnp.float32
    bf16 = jnp.bfloat16
    logit_raw = logit_ref[...]                                     # [B, Kp] (pads are -1e30)
    bsz, kp = logit_raw.shape
    iota_k = jax.lax.broadcasted_iota(jnp.int32, (bsz, kp), 1)
    valid = iota_k < num_classes

    # label / argmax / softmax (cheap; recomputed per branch so the branches are independent)
    row_max = jnp.max(logit_raw, axis=1, keepdims=True)
    first_max = jnp.min(jnp.where(logit_raw == row_max, iota_k, kp), axis=1, keepdims=True)
    pred_one = (iota_k == first_max).astype(f32)                   # torch argmax (first max)
    lbl_one = (iota_k == lbl_ref[...]).astype(f32)
    e = jnp.exp(logit_raw - row_max)
    logit = e * pl.reciprocal(jnp.sum(e, axis=1, keepdims=True), approx=True)

    tp = lbl_one * pred_one
    fn = lbl_one - tp
    fp = pred_one - tp
    tp = tp * (logit > pred_threshold).astype(f32)
    # F.normalize(p=1, dim=0) with eps=1e-12
    fn_n = fn / jnp.maximum(jnp.sum(jnp.abs(fn), axis=0, keepdims=True), 1e-12)
    fp_n = fp / jnp.maximum(jnp.sum(jnp.abs(fp), axis=0, keepdims=True), 1e-12)
    masks3 = jnp.concatenate([fn_n, fp_n, tp], axis=1)             # [B, 3*Kp]

    num_tp = jnp.sum(tp, axis=0, keepdims=True)                    # [1, Kp]
    tp_mom = jnp.where(num_tp > 1e-8, mom, 1.0).astype(f32)
    if use_p_map:
        p_map = (1.0 - logit) * alp
    else:
        p_map = jnp.full_like(logit, alp)
    neg_pad = jnp.where(valid, 0.0, -1e30).astype(f32)             # keep padded classes out of CE
    inv_tmp = 1.0 / tmp

    # BN (batch-stat affine, precomputed) + ReLU, then the 128-wide embed linear.
    y = jnp.maximum(z_ref[...].astype(f32) * sc_ref[...] + sh_ref[...], 0.0)      # [B, W]
    feat = jnp.dot(y.astype(bf16), we_ref[...], preferred_element_type=f32) + be_ref[...]

    # single wide contraction for the three local prototypes
    loc3 = jnp.einsum('bc,bm->cm', feat.astype(bf16), masks3.astype(bf16),
                      preferred_element_type=f32)                  # [C, 3*Kp]
    local_fn = loc3[:, :kp]
    local_fp = loc3[:, kp:2 * kp]
    local_tp = loc3[:, 2 * kp:] / (num_tp + 1e-12)

    gp_new = gp_ref[...] * tp_mom + local_tp * (1.0 - tp_mom)      # momentum prototype update
    gp_out_ref[...] = gp_new

    # get_score (the clamp avoids inf on an exactly-zero feature row; torch would NaN there)
    fsq = jnp.maximum(jnp.sum(feat * feat, axis=1, keepdims=True), 1e-24)
    feature = feat * jax.lax.rsqrt(fsq) + 0.1

    def coln(m):                                                   # column-wise L2 normalize
        return m / (jnp.sqrt(jnp.sum(m * m, axis=0, keepdims=True)) + 1e-12)

    protos3 = jnp.concatenate([coln(gp_new), coln(local_fn), coln(local_fp)], axis=1)
    s3 = jnp.dot(feature.astype(bf16), protos3.astype(bf16),
                 preferred_element_type=f32)                       # [B, 3*Kp]
    score_g = s3[:, :kp]
    score_fn = s3[:, kp:2 * kp] - 1.0
    score_fp = -s3[:, 2 * kp:] - 1.0
    s_fn_cl = (score_g + score_fn * p_map * tp) * inv_tmp + neg_pad
    s_fp_cl = (score_g + score_fp * p_map * tp) * inv_tmp + neg_pad

    def ce(s):                                                     # per-sample cross entropy
        m = jnp.max(s, axis=1, keepdims=True)
        lse = jnp.log(jnp.sum(jnp.exp(s - m), axis=1, keepdims=True)) + m
        return lse - jnp.sum(s * lbl_one, axis=1, keepdims=True)

    loss_ref[...] = ce(s_fn_cl) + ce(s_fp_cl)                      # [B, 1]


def _fused_cl(z, sc, sh, we, be, gp, lbl, logit, *, num_classes, alp, tmp, mom,
              pred_threshold, use_p_map, vmem_limit):
    nbr, bsz, w = z.shape
    cemb = we.shape[2]
    kp = gp.shape[2]
    kern = functools.partial(_cl_kernel, num_classes=num_classes, alp=alp, tmp=tmp,
                             mom=mom, pred_threshold=pred_threshold, use_p_map=use_p_map)

    def br(*tail):                                 # branch-stacked array, one block per grid step
        return pl.BlockSpec((None,) + tail, lambda g: (g,) + (0,) * len(tail))

    return pl.pallas_call(
        kern,
        grid=(nbr,),
        out_shape=(jax.ShapeDtypeStruct((nbr, bsz, 1), jnp.float32),
                   jax.ShapeDtypeStruct((nbr, cemb, kp), jnp.float32)),
        in_specs=[br(bsz, w), br(1, w), br(1, w), br(w, cemb), br(1, cemb), br(cemb, kp),
                  pl.BlockSpec((bsz, 1), lambda g: (0, 0)),          # shared labels
                  pl.BlockSpec((bsz, kp), lambda g: (0, 0))],        # shared logits
        out_specs=(br(bsz, 1), br(cemb, kp)),
        input_output_aliases={5: 1},                                 # prototypes updated in place
        compiler_params=pltpu.CompilerParams(dimension_semantics=("parallel",),
                                             vmem_limit_bytes=vmem_limit),
    )(z, sc, sh, we, be, gp, lbl, logit)


# ----------------------------------------------------------------------------
# JAX glue (tiny): BN finalize, parameter reorder, free reshapes, final mean.
# ----------------------------------------------------------------------------
def _bn_affine(stats, n_rows, gamma, beta, reps, w_out, eps):
    """Collapse per-tile (sum, sum^2) into training-mode BN affine (scale, shift), tiled
    `reps` times to match the packed (col = slot*h + channel) activation columns."""
    s = jnp.sum(stats, axis=0)                    # [2, h]
    mu = s[0] / n_rows
    var = jnp.maximum(s[1] / n_rows - mu * mu, 0.0)   # biased var (torch train-mode BN)
    rstd = jax.lax.rsqrt(var + eps)
    scale = gamma.reshape(-1) * rstd
    shift = beta.reshape(-1) - mu * scale
    scale = jnp.tile(scale, reps)
    shift = jnp.tile(shift, reps)
    pad = w_out - scale.shape[0]
    if pad:
        scale = jnp.pad(scale, (0, pad))
        shift = jnp.pad(shift, (0, pad))
    return scale.reshape(1, w_out), shift.reshape(1, w_out)


def _reorder_embed_w(we, h, reps, w_out):
    """torch flatten order is (h, r) -> row h*reps + r; the packed activations are ordered
    r*h + h'.  Permute the embed weight rows accordingly (done once, in JAX)."""
    emb = we.shape[1]
    w3 = jnp.transpose(we.reshape(h, reps, emb), (1, 0, 2)).reshape(reps * h, emb)
    if w_out > reps * h:
        w3 = jnp.pad(w3, ((0, w_out - reps * h), (0, 0)))
    return w3


def fr_head_forward(params, features, labels, logits, *, eps=1e-5,
                    alp=0.125, tmp=0.125, mom=0.9, pred_threshold=0.0, use_p_map=True):
    """Returns (loss, new_state); new_state holds the momentum-updated global prototypes
    (the PyTorch module mutates these buffers in place)."""
    B, C, T, V = features.shape
    hs = params['sp_w'].shape[1]
    ht = params['tp_w'].shape[1]
    ws_cols, wt_cols = V * hs, T * ht
    wmax = max(ws_cols, wt_cols)
    K = logits.shape[1]
    Kp = _round_up(K, _LANE)

    blk_budget, vmem_lim, is_v7x = _tpu_budgets()
    per_b = C * T * V * 12                    # f32 stream (x2 double-buffer) + in-kernel bf16 copy
    tb, b_pad = _choose_tb(B, per_b, blk_budget, want_multi_tile=is_v7x)
    nb = b_pad // tb

    x = features.astype(jnp.float32)
    if b_pad != B:                            # only for awkward batch sizes
        x = jnp.pad(x, ((0, b_pad - B), (0, 0), (0, 0), (0, 0)))
    x3 = x.reshape(nb, tb * C, T * V)         # free, contiguous view of the native layout

    # 0/1 pooling matrices: column k = t*V + v of the flattened (T,V) axis
    k_idx = jnp.arange(T * V)
    psp = (k_idx[:, None] % V == jnp.arange(V)[None, :]).astype(jnp.bfloat16)   # [TV, V]
    ptp = (k_idx[:, None] // V == jnp.arange(T)[None, :]).astype(jnp.bfloat16)  # [TV, T]

    zs3, zt3, st_s, st_t = _fused_squeeze(
        x3, psp, ptp, params['sp_w'], params['sp_b'], params['tp_w'], params['tp_b'],
        n_valid=B, padded=(b_pad != B), vmem_limit=vmem_lim)

    zs = zs3.reshape(b_pad, ws_cols)[:B]      # free reshape: packed col = v*hs + h
    zt = zt3.reshape(b_pad, wt_cols)[:B]      # free reshape: packed col = t*ht + h

    # TODO(synk): BatchNorm running_mean/running_var buffers are not tracked (train-mode
    #             batch statistics only), so eval-mode behavior is not reproduced.
    scale_s, shift_s = _bn_affine(st_s, B * V, params['sp_gamma'], params['sp_beta'],
                                  V, wmax, eps)
    scale_t, shift_t = _bn_affine(st_t, B * T, params['tp_gamma'], params['tp_beta'],
                                  T, wmax, eps)

    we_s = _reorder_embed_w(params['sp_cl']['w_e'], hs, V, wmax)
    we_t = _reorder_embed_w(params['tp_cl']['w_e'], ht, T, wmax)

    z_stk = jnp.stack([_pad_last(zs, wmax), _pad_last(zt, wmax)])            # [2, B, W] bf16
    sc_stk = jnp.stack([scale_s, scale_t])                                   # [2, 1, W]
    sh_stk = jnp.stack([shift_s, shift_t])
    we_stk = jnp.stack([we_s, we_t]).astype(jnp.bfloat16)                    # [2, W, 128]
    be_stk = jnp.stack([params['sp_cl']['b_e'], params['tp_cl']['b_e']])     # [2, 1, 128]
    gp_stk = jnp.stack([_pad_last(params['sp_cl']['gp'], Kp),
                        _pad_last(params['tp_cl']['gp'], Kp)])               # [2, 128, Kp]
    logits_p = jnp.pad(logits.astype(jnp.float32), ((0, 0), (0, Kp - K)),
                       constant_values=-1e30)
    lbl2d = labels.astype(jnp.int32).reshape(B, 1)

    # TODO(synk): for extremely large batches kernel 2 could be batch-tiled (partial prototype
    #             sums + finalize); with packed [B, 128] activations it comfortably fits VMEM.
    loss2, gp_new = _fused_cl(
        z_stk, sc_stk, sh_stk, we_stk, be_stk, gp_stk, lbl2d, logits_p,
        num_classes=K, alp=alp, tmp=tmp, mom=mom,
        pred_threshold=pred_threshold, use_p_map=use_p_map, vmem_limit=vmem_lim)

    loss = jnp.sum(jnp.mean(loss2, axis=(1, 2)))       # mean(spatial) + mean(temporal)
    new_state = {'sp_gp': gp_new[0, :, :K], 'tp_gp': gp_new[1, :, :K]}
    return loss, new_state


def init_params(key, in_channels, frames, joints, classes, h_channel=128):
    hs = h_channel // joints
    ht = h_channel // frames
    ks = jax.random.split(key, 6)
    f32 = jnp.float32

    def lin(k, shape, scale=0.1):
        return (scale * jax.random.normal(k, shape)).astype(f32)

    return {
        # spatio_squeeze: Conv2d(in_channels, hs, 1) + BN(hs) + ReLU
        'sp_w': lin(ks[0], (in_channels, hs)),
        'sp_b': jnp.zeros((1, hs), f32),
        'sp_gamma': jnp.ones((1, hs), f32),
        'sp_beta': jnp.zeros((1, hs), f32),
        # tempor_squeeze: Conv2d(in_channels, ht, 1) + BN(ht) + ReLU
        'tp_w': lin(ks[1], (in_channels, ht)),
        'tp_b': jnp.zeros((1, ht), f32),
        'tp_gamma': jnp.ones((1, ht), f32),
        'tp_beta': jnp.zeros((1, ht), f32),
        # CL modules (128-d embedding, per CL_Module2 default)
        'sp_cl': {
            'w_e': lin(ks[2], (hs * joints, 128)),
            'b_e': jnp.zeros((1, 128), f32),
            'gp': jax.random.normal(ks[3], (128, classes)).astype(f32),
        },
        'tp_cl': {
            'w_e': lin(ks[4], (ht * frames, 128)),
            'b_e': jnp.zeros((1, 128), f32),
            'gp': jax.random.normal(ks[5], (128, classes)).astype(f32),
        },
    }


if __name__ == "__main__":
    # h_channel=128 must be divisible by both frames and joints.
    B, C_IN, FRAMES, JOINTS, CLASSES = 2, 16, 8, 4, 10

    key = jax.random.PRNGKey(0)
    k_feat, k_lbl, k_logit, k_par = jax.random.split(key, 4)

    features = jax.random.normal(k_feat, (B, C_IN, FRAMES, JOINTS), dtype=jnp.float32)
    labels = jax.random.randint(k_lbl, (B,), 0, CLASSES, dtype=jnp.int32)
    logits = jax.random.normal(k_logit, (B, CLASSES), dtype=jnp.float32)

    params = init_params(k_par, C_IN, FRAMES, JOINTS, CLASSES, h_channel=128)

    loss, state = jax.jit(fr_head_forward)(params, features, labels, logits)
    loss = jax.block_until_ready(loss)
    assert loss.shape == () and bool(jnp.isfinite(loss))
    assert state['sp_gp'].shape == (128, CLASSES) and state['tp_gp'].shape == (128, CLASSES)
    print("KERNEL_OK")
</pallas_src>

<mosaic_0001>
module attributes {stable_mosaic.version = 11 : i64} {
  func.func @_squeeze_kernel(%arg0: i32, %arg1: memref<1x32x32xf32, #tpu.memory_space<vmem>>, %arg2: memref<32x4xbf16, #tpu.memory_space<vmem>>, %arg3: memref<32x8xbf16, #tpu.memory_space<vmem>>, %arg4: memref<16x32xf32, #tpu.memory_space<vmem>>, %arg5: memref<1x32xf32, #tpu.memory_space<vmem>>, %arg6: memref<16x16xf32, #tpu.memory_space<vmem>>, %arg7: memref<1x16xf32, #tpu.memory_space<vmem>>, %arg8: memref<1x8x32xbf16, #tpu.memory_space<vmem>>, %arg9: memref<1x16x16xbf16, #tpu.memory_space<vmem>>, %arg10: memref<1x2x32xf32, #tpu.memory_space<vmem>>, %arg11: memref<1x2x16xf32, #tpu.memory_space<vmem>>) attributes {dimension_semantics = [#tpu.dimension_semantics<parallel>], iteration_bounds = array<i64: 1>, scalar_prefetch = 0 : i64, scratch_operands = 0 : i64, tpu.core_type = #tpu.core_type<tc>, window_params = [{transform_indices = @transform_0, window_bounds = array<i64: 1, 32, 32>}, {pipeline_mode = #tpu.pipeline_mode<synchronous>, transform_indices = @transform_1, window_bounds = array<i64: 32, 4>}, {pipeline_mode = #tpu.pipeline_mode<synchronous>, transform_indices = @transform_2, window_bounds = array<i64: 32, 8>}, {pipeline_mode = #tpu.pipeline_mode<synchronous>, transform_indices = @transform_3, window_bounds = array<i64: 16, 32>}, {pipeline_mode = #tpu.pipeline_mode<synchronous>, transform_indices = @transform_4, window_bounds = array<i64: 1, 32>}, {pipeline_mode = #tpu.pipeline_mode<synchronous>, transform_indices = @transform_5, window_bounds = array<i64: 16, 16>}, {pipeline_mode = #tpu.pipeline_mode<synchronous>, transform_indices = @transform_6, window_bounds = array<i64: 1, 16>}, {transform_indices = @transform_7, window_bounds = array<i64: 1, 8, 32>}, {transform_indices = @transform_8, window_bounds = array<i64: 1, 16, 16>}, {transform_indices = @transform_9, window_bounds = array<i64: 1, 2, 32>}, {transform_indices = @transform_10, window_bounds = array<i64: 1, 2, 16>}]} {
    %c0 = arith.constant 0 : index
    %c0_0 = arith.constant 0 : index
    %c0_1 = arith.constant 0 : index
    %0 = vector.load %arg1[%c0, %c0_0, %c0_1] : memref<1x32x32xf32, #tpu.memory_space<vmem>>, vector<1x32x32xf32>
    %1 = vector.shape_cast %0 : vector<1x32x32xf32> to vector<32x32xf32>
    %2 = arith.truncf %1 : vector<32x32xf32> to vector<32x32xbf16>
    %c0_2 = arith.constant 0 : index
    %c0_3 = arith.constant 0 : index
    %3 = vector.load %arg2[%c0_2, %c0_3] : memref<32x4xbf16, #tpu.memory_space<vmem>>, vector<32x4xbf16>
    %cst = arith.constant dense<0.000000e+00> : vector<32x4xf32>
    %4 = tpu.matmul %2, %3, %cst {dimension_numbers = #tpu.dot_dimension_numbers<[1], [0], [0], [1], [0, 0, 1, 1], [], []>} : vector<32x32xbf16>, vector<32x4xbf16>, vector<32x4xf32> -> vector<32x4xf32>
    %c0_4 = arith.constant 0 : index
    %c0_5 = arith.constant 0 : index
    %5 = vector.load %arg3[%c0_4, %c0_5] : memref<32x8xbf16, #tpu.memory_space<vmem>>, vector<32x8xbf16>
    %cst_6 = arith.constant dense<0.000000e+00> : vector<32x8xf32>
    %6 = tpu.matmul %2, %5, %cst_6 {dimension_numbers = #tpu.dot_dimension_numbers<[1], [0], [0], [1], [0, 0, 1, 1], [], []>} : vector<32x32xbf16>, vector<32x8xbf16>, vector<32x8xf32> -> vector<32x8xf32>
    %7 = vector.extract_strided_slice %4 {offsets = [0, 0], sizes = [16, 4], strides = [1, 1]} : vector<32x4xf32> to vector<16x4xf32>
    %8 = tpu.transpose %7, [1, 0] : vector<16x4xf32> -> vector<4x16xf32>
    %9 = vector.extract_strided_slice %4 {offsets = [16, 0], sizes = [16, 4], strides = [1, 1]} : vector<32x4xf32> to vector<16x4xf32>
    %10 = tpu.transpose %9, [1, 0] : vector<16x4xf32> -> vector<4x16xf32>
    %11 = tpu.concatenate %8, %10 in 0 : vector<4x16xf32>, vector<4x16xf32> -> vector<8x16xf32>
    %c0_7 = arith.constant 0 : index
    %c0_8 = arith.constant 0 : index
    %12 = vector.load %arg4[%c0_7, %c0_8] : memref<16x32xf32, #tpu.memory_space<vmem>>, vector<16x32xf32>
    %cst_9 = arith.constant dense<0.000000e+00> : vector<8x32xf32>
    %13 = tpu.matmul %11, %12, %cst_9 {dimension_numbers = #tpu.dot_dimension_numbers<[1], [0], [0], [1], [0, 0, 1, 1], [], []>} : vector<8x16xf32>, vector<16x32xf32>, vector<8x32xf32> -> vector<8x32xf32>
    %cst_10 = arith.constant 1.250000e-01 : f32
    %14 = vector.broadcast %cst_10 : f32 to vector<8x32xf32>
    %15 = arith.mulf %13, %14 : vector<8x32xf32>
    %c0_11 = arith.constant 0 : index
    %c0_12 = arith.constant 0 : index
    %16 = vector.load %arg5[%c0_11, %c0_12] : memref<1x32xf32, #tpu.memory_space<vmem>>, vector<1x32xf32>
    %17 = vector.broadcast %16 : vector<1x32xf32> to vector<8x32xf32>
    %18 = arith.addf %15, %17 : vector<8x32xf32>
    %19 = vector.extract_strided_slice %6 {offsets = [0, 0], sizes = [16, 8], strides = [1, 1]} : vector<32x8xf32> to vector<16x8xf32>
    %20 = tpu.transpose %19, [1, 0] : vector<16x8xf32> -> vector<8x16xf32>
    %21 = vector.extract_strided_slice %6 {offsets = [16, 0], sizes = [16, 8], strides = [1, 1]} : vector<32x8xf32> to vector<16x8xf32>
    %22 = tpu.transpose %21, [1, 0] : vector<16x8xf32> -> vector<8x16xf32>
    %23 = tpu.concatenate %20, %22 in 0 : vector<8x16xf32>, vector<8x16xf32> -> vector<16x16xf32>
    %c0_13 = arith.constant 0 : index
    %c0_14 = arith.constant 0 : index
    %24 = vector.load %arg6[%c0_13, %c0_14] : memref<16x16xf32, #tpu.memory_space<vmem>>, vector<16x16xf32>
    %cst_15 = arith.constant dense<0.000000e+00> : vector<16x16xf32>
    %25 = tpu.matmul %23, %24, %cst_15 {dimension_numbers = #tpu.dot_dimension_numbers<[1], [0], [0], [1], [0, 0, 1, 1], [], []>} : vector<16x16xf32>, vector<16x16xf32>, vector<16x16xf32> -> vector<16x16xf32>
    %cst_16 = arith.constant 2.500000e-01 : f32
    %26 = vector.broadcast %cst_16 : f32 to vector<16x16xf32>
    %27 = arith.mulf %25, %26 : vector<16x16xf32>
    %c0_17 = arith.constant 0 : index
    %c0_18 = arith.constant 0 : index
    %28 = vector.load %arg7[%c0_17, %c0_18] : memref<1x16xf32, #tpu.memory_space<vmem>>, vector<1x16xf32>
    %29 = vector.broadcast %28 : vector<1x16xf32> to vector<16x16xf32>
    %30 = arith.addf %27, %29 : vector<16x16xf32>
    %31 = arith.truncf %18 : vector<8x32xf32> to vector<8x32xbf16>
    %c0_19 = arith.constant 0 : index
    %c0_20 = arith.constant 0 : index
    %c0_21 = arith.constant 0 : index
    %32 = vector.load %arg8[%c0_19, %c0_20, %c0_21] : memref<1x8x32xbf16, #tpu.memory_space<vmem>>, vector<1x8x32xbf16>
    %33 = vector.shape_cast %32 : vector<1x8x32xbf16> to vector<8x32xbf16>
    %34 = vector.shape_cast %31 : vector<8x32xbf16> to vector<1x8x32xbf16>
    tpu.vector_store %arg8[%c0_19, %c0_20, %c0_21], %34 {strides = array<i32>} : memref<1x8x32xbf16, #tpu.memory_space<vmem>>, vector<1x8x32xbf16>,
    %35 = arith.truncf %30 : vector<16x16xf32> to vector<16x16xbf16>
    %c0_22 = arith.constant 0 : index
    %c0_23 = arith.constant 0 : index
    %c0_24 = arith.constant 0 : index
    %36 = vector.load %arg9[%c0_22, %c0_23, %c0_24] : memref<1x16x16xbf16, #tpu.memory_space<vmem>>, vector<1x16x16xbf16>
    %37 = vector.shape_cast %36 : vector<1x16x16xbf16> to vector<16x16xbf16>
    %38 = vector.shape_cast %35 : vector<16x16xbf16> to vector<1x16x16xbf16>
    tpu.vector_store %arg9[%c0_22, %c0_23, %c0_24], %38 {strides = array<i32>} : memref<1x16x16xbf16, #tpu.memory_space<vmem>>, vector<1x16x16xbf16>,
    %cst_25 = arith.constant dense<0.000000e+00> : vector<32xf32>
    %39 = vector.multi_reduction <add>, %18, %cst_25 [0] : vector<8x32xf32> to vector<32xf32>
    %40 = vector.shape_cast %39 : vector<32xf32> to vector<1x32xf32>
    %41 = arith.mulf %18, %18 : vector<8x32xf32>
    %cst_26 = arith.constant dense<0.000000e+00> : vector<32xf32>
    %42 = vector.multi_reduction <add>, %41, %cst_26 [0] : vector<8x32xf32> to vector<32xf32>
    %43 = vector.shape_cast %42 : vector<32xf32> to vector<1x32xf32>
    %44 = tpu.concatenate %40, %43 in 0 : vector<1x32xf32>, vector<1x32xf32> -> vector<2x32xf32>
    %c0_27 = arith.constant 0 : index
    %c0_28 = arith.constant 0 : index
    %c0_29 = arith.constant 0 : index
    %45 = vector.load %arg10[%c0_27, %c0_28, %c0_29] : memref<1x2x32xf32, #tpu.memory_space<vmem>>, vector<1x2x32xf32>
    %46 = vector.shape_cast %45 : vector<1x2x32xf32> to vector<2x32xf32>
    %47 = vector.shape_cast %44 : vector<2x32xf32> to vector<1x2x32xf32>
    tpu.vector_store %arg10[%c0_27, %c0_28, %c0_29], %47 {strides = array<i32>} : memref<1x2x32xf32, #tpu.memory_space<vmem>>, vector<1x2x32xf32>,
    %cst_30 = arith.constant dense<0.000000e+00> : vector<16xf32>
    %48 = vector.multi_reduction <add>, %30, %cst_30 [0] : vector<16x16xf32> to vector<16xf32>
    %49 = vector.shape_cast %48 : vector<16xf32> to vector<1x16xf32>
    %50 = arith.mulf %30, %30 : vector<16x16xf32>
    %cst_31 = arith.constant dense<0.000000e+00> : vector<16xf32>
    %51 = vector.multi_reduction <add>, %50, %cst_31 [0] : vector<16x16xf32> to vector<16xf32>
    %52 = vector.shape_cast %51 : vector<16xf32> to vector<1x16xf32>
    %53 = tpu.concatenate %49, %52 in 0 : vector<1x16xf32>, vector<1x16xf32> -> vector<2x16xf32>
    %c0_32 = arith.constant 0 : index
    %c0_33 = arith.constant 0 : index
    %c0_34 = arith.constant 0 : index
    %54 = vector.load %arg11[%c0_32, %c0_33, %c0_34] : memref<1x2x16xf32, #tpu.memory_space<vmem>>, vector<1x2x16xf32>
    %55 = vector.shape_cast %54 : vector<1x2x16xf32> to vector<2x16xf32>
    %56 = vector.shape_cast %53 : vector<2x16xf32> to vector<1x2x16xf32>
    tpu.vector_store %arg11[%c0_32, %c0_33, %c0_34], %56 {strides = array<i32>} : memref<1x2x16xf32, #tpu.memory_space<vmem>>, vector<1x2x16xf32>,
    return
  }
  func.func @transform_0(%arg0: i32) -> (i32, i32, i32) {
    %c0_i32 = arith.constant 0 : i32
    %c0_i32_0 = arith.constant 0 : i32
    %c0_i32_1 = arith.constant 0 : i32
    return %arg0, %c0_i32, %c0_i32_0 : i32, i32, i32
  }
  func.func @transform_1(%arg0: i32) -> (i32, i32) {
    %c0_i32 = arith.constant 0 : i32
    %c0_i32_0 = arith.constant 0 : i32
    %c0_i32_1 = arith.constant 0 : i32
    return %c0_i32, %c0_i32_0 : i32, i32
  }
  func.func @transform_2(%arg0: i32) -> (i32, i32) {
    %c0_i32 = arith.constant 0 : i32
    %c0_i32_0 = arith.constant 0 : i32
    %c0_i32_1 = arith.constant 0 : i32
    return %c0_i32, %c0_i32_0 : i32, i32
  }
  func.func @transform_3(%arg0: i32) -> (i32, i32) {
    %c0_i32 = arith.constant 0 : i32
    %c0_i32_0 = arith.constant 0 : i32
    %c0_i32_1 = arith.constant 0 : i32
    return %c0_i32, %c0_i32_0 : i32, i32
  }
  func.func @transform_4(%arg0: i32) -> (i32, i32) {
    %c0_i32 = arith.constant 0 : i32
    %c0_i32_0 = arith.constant 0 : i32
    %c0_i32_1 = arith.constant 0 : i32
    return %c0_i32, %c0_i32_0 : i32, i32
  }
  func.func @transform_5(%arg0: i32) -> (i32, i32) {
    %c0_i32 = arith.constant 0 : i32
    %c0_i32_0 = arith.constant 0 : i32
    %c0_i32_1 = arith.constant 0 : i32
    return %c0_i32, %c0_i32_0 : i32, i32
  }
  func.func @transform_6(%arg0: i32) -> (i32, i32) {
    %c0_i32 = arith.constant 0 : i32
    %c0_i32_0 = arith.constant 0 : i32
    %c0_i32_1 = arith.constant 0 : i32
    return %c0_i32, %c0_i32_0 : i32, i32
  }
  func.func @transform_7(%arg0: i32) -> (i32, i32, i32) {
    %c0_i32 = arith.constant 0 : i32
    %c0_i32_0 = arith.constant 0 : i32
    %c0_i32_1 = arith.constant 0 : i32
    return %arg0, %c0_i32, %c0_i32_0 : i32, i32, i32
  }
  func.func @transform_8(%arg0: i32) -> (i32, i32, i32) {
    %c0_i32 = arith.constant 0 : i32
    %c0_i32_0 = arith.constant 0 : i32
    %c0_i32_1 = arith.constant 0 : i32
    return %arg0, %c0_i32, %c0_i32_0 : i32, i32, i32
  }
  func.func @transform_9(%arg0: i32) -> (i32, i32, i32) {
    %c0_i32 = arith.constant 0 : i32
    %c0_i32_0 = arith.constant 0 : i32
    %c0_i32_1 = arith.constant 0 : i32
    return %arg0, %c0_i32, %c0_i32_0 : i32, i32, i32
  }
  func.func @transform_10(%arg0: i32) -> (i32, i32, i32) {
    %c0_i32 = arith.constant 0 : i32
    %c0_i32_0 = arith.constant 0 : i32
    %c0_i32_1 = arith.constant 0 : i32
    return %arg0, %c0_i32, %c0_i32_0 : i32, i32, i32
  }
}

module attributes {stable_mosaic.version = 11 : i64} {
  func.func @_cl_kernel(%arg0: i32, %arg1: memref<1x2x128xbf16, #tpu.memory_space<vmem>>, %arg2: memref<1x1x128xf32, #tpu.memory_space<vmem>>, %arg3: memref<1x1x128xf32, #tpu.memory_space<vmem>>, %arg4: memref<1x128x128xbf16, #tpu.memory_space<vmem>>, %arg5: memref<1x1x128xf32, #tpu.memory_space<vmem>>, %arg6: memref<1x128x128xf32, #tpu.memory_space<vmem>>, %arg7: memref<2x1xi32, #tpu.memory_space<vmem>>, %arg8: memref<2x128xf32, #tpu.memory_space<vmem>>, %arg9: memref<1x2x1xf32, #tpu.memory_space<vmem>>, %arg10: memref<1x128x128xf32, #tpu.memory_space<vmem>>) attributes {dimension_semantics = [#tpu.dimension_semantics<parallel>], iteration_bounds = array<i64: 2>, scalar_prefetch = 0 : i64, scratch_operands = 0 : i64, tpu.core_type = #tpu.core_type<tc>, window_params = [{transform_indices = @transform_0, window_bounds = array<i64: 1, 2, 128>}, {transform_indices = @transform_1, window_bounds = array<i64: 1, 1, 128>}, {transform_indices = @transform_2, window_bounds = array<i64: 1, 1, 128>}, {transform_indices = @transform_3, window_bounds = array<i64: 1, 128, 128>}, {transform_indices = @transform_4, window_bounds = array<i64: 1, 1, 128>}, {transform_indices = @transform_5, window_bounds = array<i64: 1, 128, 128>}, {pipeline_mode = #tpu.pipeline_mode<synchronous>, transform_indices = @transform_6, window_bounds = array<i64: 2, 1>}, {pipeline_mode = #tpu.pipeline_mode<synchronous>, transform_indices = @transform_7, window_bounds = array<i64: 2, 128>}, {transform_indices = @transform_8, window_bounds = array<i64: 1, 2, 1>}, {transform_indices = @transform_9, window_bounds = array<i64: 1, 128, 128>}]} {
    %c0 = arith.constant 0 : index
    %c0_0 = arith.constant 0 : index
    %0 = vector.load %arg8[%c0, %c0_0] : memref<2x128xf32, #tpu.memory_space<vmem>>, vector<2x128xf32>
    %1 = tpu.iota {dimensions = array<i32: 1>} : vector<2x128xi32>
    %c10_i32 = arith.constant 10 : i32
    %2 = vector.broadcast %c10_i32 : i32 to vector<2x128xi32>
    %3 = arith.cmpi slt, %1, %2 : vector<2x128xi32>
    %cst = arith.constant dense<0xFF800000> : vector<2xf32>
    %4 = vector.multi_reduction <maximumf>, %0, %cst [1] : vector<2x128xf32> to vector<2xf32>
    %5 = vector.shape_cast %4 : vector<2xf32> to vector<2x1xf32>
    %6 = vector.broadcast %5 : vector<2x1xf32> to vector<2x128xf32>
    %7 = arith.cmpf oeq, %0, %6 : vector<2x128xf32>
    %c128_i32 = arith.constant 128 : i32
    %8 = vector.broadcast %c128_i32 : i32 to vector<2x128xi32>
    %9 = arith.select %7, %1, %8 : vector<2x128xi1>, vector<2x128xi32>
    %cst_1 = arith.constant dense<2147483647> : vector<2xi32>
    %10 = vector.multi_reduction <minsi>, %9, %cst_1 [1] : vector<2x128xi32> to vector<2xi32>
    %11 = vector.shape_cast %10 : vector<2xi32> to vector<2x1xi32>
    %12 = vector.broadcast %11 : vector<2x1xi32> to vector<2x128xi32>
    %13 = arith.cmpi eq, %1, %12 : vector<2x128xi32>
    %14 = arith.extui %13 : vector<2x128xi1> to vector<2x128xi32>
    %15 = arith.sitofp %14 : vector<2x128xi32> to vector<2x128xf32>
    %c0_2 = arith.constant 0 : index
    %c0_3 = arith.constant 0 : index
    %16 = vector.load %arg7[%c0_2, %c0_3] : memref<2x1xi32, #tpu.memory_space<vmem>>, vector<2x1xi32>
    %17 = vector.broadcast %16 : vector<2x1xi32> to vector<2x128xi32>
    %18 = arith.cmpi eq, %1, %17 : vector<2x128xi32>
    %19 = arith.extui %18 : vector<2x128xi1> to vector<2x128xi32>
    %20 = arith.sitofp %19 : vector<2x128xi32> to vector<2x128xf32>
    %21 = vector.broadcast %5 : vector<2x1xf32> to vector<2x128xf32>
    %22 = arith.subf %0, %21 : vector<2x128xf32>
    %23 = math.exp %22 : vector<2x128xf32>
    %cst_4 = arith.constant dense<0.000000e+00> : vector<2xf32>
    %24 = vector.multi_reduction <add>, %23, %cst_4 [1] : vector<2x128xf32> to vector<2xf32>
    %25 = vector.shape_cast %24 : vector<2xf32> to vector<2x1xf32>
    %26 = tpu.reciprocal %25 {approx = true} : vector<2x1xf32> -> vector<2x1xf32>
    %27 = vector.broadcast %26 : vector<2x1xf32> to vector<2x128xf32>
    %28 = arith.mulf %23, %27 : vector<2x128xf32>
    %29 = arith.mulf %20, %15 : vector<2x128xf32>
    %30 = arith.subf %20, %29 : vector<2x128xf32>
    %31 = arith.subf %15, %29 : vector<2x128xf32>
    %cst_5 = arith.constant 0.000000e+00 : f32
    %32 = vector.broadcast %cst_5 : f32 to vector<2x128xf32>
    %33 = arith.cmpf ogt, %28, %32 : vector<2x128xf32>
    %34 = arith.extui %33 : vector<2x128xi1> to vector<2x128xi32>
    %35 = arith.sitofp %34 : vector<2x128xi32> to vector<2x128xf32>
    %36 = arith.mulf %29, %35 : vector<2x128xf32>
    %37 = math.absf %30 : vector<2x128xf32>
    %cst_6 = arith.constant dense<0.000000e+00> : vector<128xf32>
    %38 = vector.multi_reduction <add>, %37, %cst_6 [0] : vector<2x128xf32> to vector<128xf32>
    %39 = vector.shape_cast %38 : vector<128xf32> to vector<1x128xf32>
    %cst_7 = arith.constant 9.99999996E-13 : f32
    %40 = vector.broadcast %cst_7 : f32 to vector<1x128xf32>
    %41 = arith.maximumf %39, %40 : vector<1x128xf32>
    %42 = vector.broadcast %41 : vector<1x128xf32> to vector<2x128xf32>
    %43 = arith.divf %30, %42 : vector<2x128xf32>
    %44 = math.absf %31 : vector<2x128xf32>
    %cst_8 = arith.constant dense<0.000000e+00> : vector<128xf32>
    %45 = vector.multi_reduction <add>, %44, %cst_8 [0] : vector<2x128xf32> to vector<128xf32>
    %46 = vector.shape_cast %45 : vector<128xf32> to vector<1x128xf32>
    %cst_9 = arith.constant 9.99999996E-13 : f32
    %47 = vector.broadcast %cst_9 : f32 to vector<1x128xf32>
    %48 = arith.maximumf %46, %47 : vector<1x128xf32>
    %49 = vector.broadcast %48 : vector<1x128xf32> to vector<2x128xf32>
    %50 = arith.divf %31, %49 : vector<2x128xf32>
    %51 = tpu.concatenate %43, %50, %36 in 1 : vector<2x128xf32>, vector<2x128xf32>, vector<2x128xf32> -> vector<2x384xf32>
    %cst_10 = arith.constant dense<0.000000e+00> : vector<128xf32>
    %52 = vector.multi_reduction <add>, %36, %cst_10 [0] : vector<2x128xf32> to vector<128xf32>
    %53 = vector.shape_cast %52 : vector<128xf32> to vector<1x128xf32>
    %cst_11 = arith.constant 9.99999993E-9 : f32
    %54 = vector.broadcast %cst_11 : f32 to vector<1x128xf32>
    %55 = arith.cmpf ogt, %53, %54 : vector<1x128xf32>
    %cst_12 = arith.constant 0.899999976 : f32
    %cst_13 = arith.constant 1.000000e+00 : f32
    %56 = vector.broadcast %cst_12 : f32 to vector<1x128xf32>
    %57 = vector.broadcast %cst_13 : f32 to vector<1x128xf32>
    %58 = arith.select %55, %56, %57 : vector<1x128xi1>, vector<1x128xf32>
    %cst_14 = arith.constant 1.000000e+00 : f32
    %59 = vector.broadcast %cst_14 : f32 to vector<2x128xf32>
    %60 = arith.subf %59, %28 : vector<2x128xf32>
    %cst_15 = arith.constant 1.250000e-01 : f32
    %61 = vector.broadcast %cst_15 : f32 to vector<2x128xf32>
    %62 = arith.mulf %60, %61 : vector<2x128xf32>
    %cst_16 = arith.constant 0.000000e+00 : f32
    %cst_17 = arith.constant -1.000000e+30 : f32
    %63 = vector.broadcast %cst_16 : f32 to vector<2x128xf32>
    %64 = vector.broadcast %cst_17 : f32 to vector<2x128xf32>
    %65 = arith.select %3, %63, %64 : vector<2x128xi1>, vector<2x128xf32>
    %c0_18 = arith.constant 0 : index
    %c0_19 = arith.constant 0 : index
    %c0_20 = arith.constant 0 : index
    %66 = vector.load %arg1[%c0_18, %c0_19, %c0_20] : memref<1x2x128xbf16, #tpu.memory_space<vmem>>, vector<1x2x128xbf16>
    %67 = vector.shape_cast %66 : vector<1x2x128xbf16> to vector<2x128xbf16>
    %68 = arith.extf %67 : vector<2x128xbf16> to vector<2x128xf32>
    %c0_21 = arith.constant 0 : index
    %c0_22 = arith.constant 0 : index
    %c0_23 = arith.constant 0 : index
    %69 = vector.load %arg2[%c0_21, %c0_22, %c0_23] : memref<1x1x128xf32, #tpu.memory_space<vmem>>, vector<1x1x128xf32>
    %70 = vector.shape_cast %69 : vector<1x1x128xf32> to vector<1x128xf32>
    %71 = vector.broadcast %70 : vector<1x128xf32> to vector<2x128xf32>
    %72 = arith.mulf %68, %71 : vector<2x128xf32>
    %c0_24 = arith.constant 0 : index
    %c0_25 = arith.constant 0 : index
    %c0_26 = arith.constant 0 : index
    %73 = vector.load %arg3[%c0_24, %c0_25, %c0_26] : memref<1x1x128xf32, #tpu.memory_space<vmem>>, vector<1x1x128xf32>
    %74 = vector.shape_cast %73 : vector<1x1x128xf32> to vector<1x128xf32>
    %75 = vector.broadcast %74 : vector<1x128xf32> to vector<2x128xf32>
    %76 = arith.addf %72, %75 : vector<2x128xf32>
    %cst_27 = arith.constant 0.000000e+00 : f32
    %77 = vector.broadcast %cst_27 : f32 to vector<2x128xf32>
    %78 = arith.maximumf %76, %77 : vector<2x128xf32>
    %79 = arith.truncf %78 : vector<2x128xf32> to vector<2x128xbf16>
    %c0_28 = arith.constant 0 : index
    %c0_29 = arith.constant 0 : index
    %c0_30 = arith.constant 0 : index
    %80 = vector.load %arg4[%c0_28, %c0_29, %c0_30] : memref<1x128x128xbf16, #tpu.memory_space<vmem>>, vector<1x128x128xbf16>
    %81 = vector.shape_cast %80 : vector<1x128x128xbf16> to vector<128x128xbf16>
    %cst_31 = arith.constant dense<0.000000e+00> : vector<2x128xf32>
    %82 = tpu.matmul %79, %81, %cst_31 {dimension_numbers = #tpu.dot_dimension_numbers<[1], [0], [0], [1], [0, 0, 1, 1], [], []>} : vector<2x128xbf16>, vector<128x128xbf16>, vector<2x128xf32> -> vector<2x128xf32>
    %c0_32 = arith.constant 0 : index
    %c0_33 = arith.constant 0 : index
    %c0_34 = arith.constant 0 : index
    %83 = vector.load %arg5[%c0_32, %c0_33, %c0_34] : memref<1x1x128xf32, #tpu.memory_space<vmem>>, vector<1x1x128xf32>
    %84 = vector.shape_cast %83 : vector<1x1x128xf32> to vector<1x128xf32>
    %85 = vector.broadcast %84 : vector<1x128xf32> to vector<2x128xf32>
    %86 = arith.addf %82, %85 : vector<2x128xf32>
    %87 = arith.truncf %86 : vector<2x128xf32> to vector<2x128xbf16>
    %88 = arith.truncf %51 : vector<2x384xf32> to vector<2x384xbf16>
    "tpu.trace_start"() <{level = 10 : i32, message = "bc,bm->cm"}> : () -> ()
    %cst_35 = arith.constant dense<0.000000e+00> : vector<128x384xf32>
    %89 = tpu.matmul %87, %88, %cst_35 {dimension_numbers = #tpu.dot_dimension_numbers<[0], [0], [1], [1], [0, 1, 1, 1], [], []>} : vector<2x128xbf16>, vector<2x384xbf16>, vector<128x384xf32> -> vector<128x384xf32>
    "tpu.trace_stop"() : () -> ()
    %90 = vector.extract_strided_slice %89 {offsets = [0, 0], sizes = [128, 128], strides = [1, 1]} : vector<128x384xf32> to vector<128x128xf32>
    %91 = vector.extract_strided_slice %89 {offsets = [0, 128], sizes = [128, 128], strides = [1, 1]} : vector<128x384xf32> to vector<128x128xf32>
    %92 = vector.extract_strided_slice %89 {offsets = [0, 256], sizes = [128, 128], strides = [1, 1]} : vector<128x384xf32> to vector<128x128xf32>
    %cst_36 = arith.constant 9.99999996E-13 : f32
    %93 = vector.broadcast %cst_36 : f32 to vector<1x128xf32>
    %94 = arith.addf %53, %93 : vector<1x128xf32>
    %95 = vector.broadcast %94 : vector<1x128xf32> to vector<128x128xf32>
    %96 = arith.divf %92, %95 : vector<128x128xf32>
    %c0_37 = arith.constant 0 : index
    %c0_38 = arith.constant 0 : index
    %c0_39 = arith.constant 0 : index
    %97 = vector.load %arg6[%c0_37, %c0_38, %c0_39] : memref<1x128x128xf32, #tpu.memory_space<vmem>>, vector<1x128x128xf32>
    %98 = vector.shape_cast %97 : vector<1x128x128xf32> to vector<128x128xf32>
    %99 = vector.broadcast %58 : vector<1x128xf32> to vector<128x128xf32>
    %100 = arith.mulf %98, %99 : vector<128x128xf32>
    %cst_40 = arith.constant 1.000000e+00 : f32
    %101 = vector.broadcast %cst_40 : f32 to vector<1x128xf32>
    %102 = arith.subf %101, %58 : vector<1x128xf32>
    %103 = vector.broadcast %102 : vector<1x128xf32> to vector<128x128xf32>
    %104 = arith.mulf %96, %103 : vector<128x128xf32>
    %105 = arith.addf %100, %104 : vector<128x128xf32>
    %c0_41 = arith.constant 0 : index
    %c0_42 = arith.constant 0 : index
    %c0_43 = arith.constant 0 : index
    %106 = vector.load %arg10[%c0_41, %c0_42, %c0_43] : memref<1x128x128xf32, #tpu.memory_space<vmem>>, vector<1x128x128xf32>
    %107 = vector.shape_cast %106 : vector<1x128x128xf32> to vector<128x128xf32>
    %108 = vector.shape_cast %105 : vector<128x128xf32> to vector<1x128x128xf32>
    tpu.vector_store %arg10[%c0_41, %c0_42, %c0_43], %108 {strides = array<i32>} : memref<1x128x128xf32, #tpu.memory_space<vmem>>, vector<1x128x128xf32>,
    %109 = arith.mulf %86, %86 : vector<2x128xf32>
    %cst_44 = arith.constant dense<0.000000e+00> : vector<2xf32>
    %110 = vector.multi_reduction <add>, %109, %cst_44 [1] : vector<2x128xf32> to vector<2xf32>
    %111 = vector.shape_cast %110 : vector<2xf32> to vector<2x1xf32>
    %cst_45 = arith.constant 1.000000e-24 : f32
    %112 = vector.broadcast %cst_45 : f32 to vector<2x1xf32>
    %113 = arith.maximumf %111, %112 : vector<2x1xf32>
    %114 = math.rsqrt %113 : vector<2x1xf32>
    %115 = vector.broadcast %114 : vector<2x1xf32> to vector<2x128xf32>
    %116 = arith.mulf %86, %115 : vector<2x128xf32>
    %cst_46 = arith.constant 1.000000e-01 : f32
    %117 = vector.broadcast %cst_46 : f32 to vector<2x128xf32>
    %118 = arith.addf %116, %117 : vector<2x128xf32>
    %119 = arith.mulf %105, %105 : vector<128x128xf32>
    %cst_47 = arith.constant dense<0.000000e+00> : vector<128xf32>
    %120 = vector.multi_reduction <add>, %119, %cst_47 [0] : vector<128x128xf32> to vector<128xf32>
    %121 = vector.shape_cast %120 : vector<128xf32> to vector<1x128xf32>
    %122 = math.sqrt %121 : vector<1x128xf32>
    %cst_48 = arith.constant 9.99999996E-13 : f32
    %123 = vector.broadcast %cst_48 : f32 to vector<1x128xf32>
    %124 = arith.addf %122, %123 : vector<1x128xf32>
    %125 = vector.broadcast %124 : vector<1x128xf32> to vector<128x128xf32>
    %126 = arith.divf %105, %125 : vector<128x128xf32>
    %127 = arith.mulf %90, %90 : vector<128x128xf32>
    %cst_49 = arith.constant dense<0.000000e+00> : vector<128xf32>
    %128 = vector.multi_reduction <add>, %127, %cst_49 [0] : vector<128x128xf32> to vector<128xf32>
    %129 = vector.shape_cast %128 : vector<128xf32> to vector<1x128xf32>
    %130 = math.sqrt %129 : vector<1x128xf32>
    %cst_50 = arith.constant 9.99999996E-13 : f32
    %131 = vector.broadcast %cst_50 : f32 to vector<1x128xf32>
    %132 = arith.addf %130, %131 : vector<1x128xf32>
    %133 = vector.broadcast %132 : vector<1x128xf32> to vector<128x128xf32>
    %134 = arith.divf %90, %133 : vector<128x128xf32>
    %135 = arith.mulf %91, %91 : vector<128x128xf32>
    %cst_51 = arith.constant dense<0.000000e+00> : vector<128xf32>
    %136 = vector.multi_reduction <add>, %135, %cst_51 [0] : vector<128x128xf32> to vector<128xf32>
    %137 = vector.shape_cast %136 : vector<128xf32> to vector<1x128xf32>
    %138 = math.sqrt %137 : vector<1x128xf32>
    %cst_52 = arith.constant 9.99999996E-13 : f32
    %139 = vector.broadcast %cst_52 : f32 to vector<1x128xf32>
    %140 = arith.addf %138, %139 : vector<1x128xf32>
    %141 = vector.broadcast %140 : vector<1x128xf32> to vector<128x128xf32>
    %142 = arith.divf %91, %141 : vector<128x128xf32>
    %143 = tpu.concatenate %126, %134, %142 in 1 : vector<128x128xf32>, vector<128x128xf32>, vector<128x128xf32> -> vector<128x384xf32>
    %144 = arith.truncf %118 : vector<2x128xf32> to vector<2x128xbf16>
    %145 = arith.truncf %143 : vector<128x384xf32> to vector<128x384xbf16>
    %cst_53 = arith.constant dense<0.000000e+00> : vector<2x384xf32>
    %146 = tpu.matmul %144, %145, %cst_53 {dimension_numbers = #tpu.dot_dimension_numbers<[1], [0], [0], [1], [0, 0, 1, 1], [], []>} : vector<2x128xbf16>, vector<128x384xbf16>, vector<2x384xf32> -> vector<2x384xf32>
    %147 = vector.extract_strided_slice %146 {offsets = [0, 0], sizes = [2, 128], strides = [1, 1]} : vector<2x384xf32> to vector<2x128xf32>
    %148 = vector.extract_strided_slice %146 {offsets = [0, 128], sizes = [2, 128], strides = [1, 1]} : vector<2x384xf32> to vector<2x128xf32>
    %cst_54 = arith.constant 1.000000e+00 : f32
    %149 = vector.broadcast %cst_54 : f32 to vector<2x128xf32>
    %150 = arith.subf %148, %149 : vector<2x128xf32>
    %151 = vector.extract_strided_slice %146 {offsets = [0, 256], sizes = [2, 128], strides = [1, 1]} : vector<2x384xf32> to vector<2x128xf32>
    %cst_55 = arith.constant 0.000000e+00 : f32
    %152 = vector.broadcast %cst_55 : f32 to vector<2x128xf32>
    %153 = arith.subf %152, %151 : vector<2x128xf32>
    %cst_56 = arith.constant 1.000000e+00 : f32
    %154 = vector.broadcast %cst_56 : f32 to vector<2x128xf32>
    %155 = arith.subf %153, %154 : vector<2x128xf32>
    %156 = arith.mulf %150, %62 : vector<2x128xf32>
    %157 = arith.mulf %156, %36 : vector<2x128xf32>
    %158 = arith.addf %147, %157 : vector<2x128xf32>
    %cst_57 = arith.constant 8.000000e+00 : f32
    %159 = vector.broadcast %cst_57 : f32 to vector<2x128xf32>
    %160 = arith.mulf %158, %159 : vector<2x128xf32>
    %161 = arith.addf %160, %65 : vector<2x128xf32>
    %162 = arith.mulf %155, %62 : vector<2x128xf32>
    %163 = arith.mulf %162, %36 : vector<2x128xf32>
    %164 = arith.addf %147, %163 : vector<2x128xf32>
    %cst_58 = arith.constant 8.000000e+00 : f32
    %165 = vector.broadcast %cst_58 : f32 to vector<2x128xf32>
    %166 = arith.mulf %164, %165 : vector<2x128xf32>
    %167 = arith.addf %166, %65 : vector<2x128xf32>
    %cst_59 = arith.constant dense<0xFF800000> : vector<2xf32>
    %168 = vector.multi_reduction <maximumf>, %161, %cst_59 [1] : vector<2x128xf32> to vector<2xf32>
    %169 = vector.shape_cast %168 : vector<2xf32> to vector<2x1xf32>
    %170 = vector.broadcast %169 : vector<2x1xf32> to vector<2x128xf32>
    %171 = arith.subf %161, %170 : vector<2x128xf32>
    %172 = math.exp %171 : vector<2x128xf32>
    %cst_60 = arith.constant dense<0.000000e+00> : vector<2xf32>
    %173 = vector.multi_reduction <add>, %172, %cst_60 [1] : vector<2x128xf32> to vector<2xf32>
    %174 = vector.shape_cast %173 : vector<2xf32> to vector<2x1xf32>
    %175 = math.log %174 : vector<2x1xf32>
    %176 = arith.addf %175, %169 : vector<2x1xf32>
    %177 = arith.mulf %161, %20 : vector<2x128xf32>
    %cst_61 = arith.constant dense<0.000000e+00> : vector<2xf32>
    %178 = vector.multi_reduction <add>, %177, %cst_61 [1] : vector<2x128xf32> to vector<2xf32>
    %179 = vector.shape_cast %178 : vector<2xf32> to vector<2x1xf32>
    %180 = arith.subf %176, %179 : vector<2x1xf32>
    %cst_62 = arith.constant dense<0xFF800000> : vector<2xf32>
    %181 = vector.multi_reduction <maximumf>, %167, %cst_62 [1] : vector<2x128xf32> to vector<2xf32>
    %182 = vector.shape_cast %181 : vector<2xf32> to vector<2x1xf32>
    %183 = vector.broadcast %182 : vector<2x1xf32> to vector<2x128xf32>
    %184 = arith.subf %167, %183 : vector<2x128xf32>
    %185 = math.exp %184 : vector<2x128xf32>
    %cst_63 = arith.constant dense<0.000000e+00> : vector<2xf32>
    %186 = vector.multi_reduction <add>, %185, %cst_63 [1] : vector<2x128xf32> to vector<2xf32>
    %187 = vector.shape_cast %186 : vector<2xf32> to vector<2x1xf32>
    %188 = math.log %187 : vector<2x1xf32>
    %189 = arith.addf %188, %182 : vector<2x1xf32>
    %190 = arith.mulf %167, %20 : vector<2x128xf32>
    %cst_64 = arith.constant dense<0.000000e+00> : vector<2xf32>
    %191 = vector.multi_reduction <add>, %190, %cst_64 [1] : vector<2x128xf32> to vector<2xf32>
    %192 = vector.shape_cast %191 : vector<2xf32> to vector<2x1xf32>
    %193 = arith.subf %189, %192 : vector<2x1xf32>
    %194 = arith.addf %180, %193 : vector<2x1xf32>
    %c0_65 = arith.constant 0 : index
    %c0_66 = arith.constant 0 : index
    %c0_67 = arith.constant 0 : index
    %195 = vector.load %arg9[%c0_65, %c0_66, %c0_67] : memref<1x2x1xf32, #tpu.memory_space<vmem>>, vector<1x2x1xf32>
    %196 = vector.shape_cast %195 : vector<1x2x1xf32> to vector<2x1xf32>
    %197 = vector.shape_cast %194 : vector<2x1xf32> to vector<1x2x1xf32>
    tpu.vector_store %arg9[%c0_65, %c0_66, %c0_67], %197 {strides = array<i32>} : memref<1x2x1xf32, #tpu.memory_space<vmem>>, vector<1x2x1xf32>,
    return
  }
  func.func @transform_0(%arg0: i32) -> (i32, i32, i32) {
    %c0_i32 = arith.constant 0 : i32
    %c0_i32_0 = arith.constant 0 : i32
    %c0_i32_1 = arith.constant 0 : i32
    return %arg0, %c0_i32, %c0_i32_0 : i32, i32, i32
  }
  func.func @transform_1(%arg0: i32) -> (i32, i32, i32) {
    %c0_i32 = arith.constant 0 : i32
    %c0_i32_0 = arith.constant 0 : i32
    %c0_i32_1 = arith.constant 0 : i32
    return %arg0, %c0_i32, %c0_i32_0 : i32, i32, i32
  }
  func.func @transform_2(%arg0: i32) -> (i32, i32, i32) {
    %c0_i32 = arith.constant 0 : i32
    %c0_i32_0 = arith.constant 0 : i32
    %c0_i32_1 = arith.constant 0 : i32
    return %arg0, %c0_i32, %c0_i32_0 : i32, i32, i32
  }
  func.func @transform_3(%arg0: i32) -> (i32, i32, i32) {
    %c0_i32 = arith.constant 0 : i32
    %c0_i32_0 = arith.constant 0 : i32
    %c0_i32_1 = arith.constant 0 : i32
    return %arg0, %c0_i32, %c0_i32_0 : i32, i32, i32
  }
  func.func @transform_4(%arg0: i32) -> (i32, i32, i32) {
    %c0_i32 = arith.constant 0 : i32
    %c0_i32_0 = arith.constant 0 : i32
    %c0_i32_1 = arith.constant 0 : i32
    return %arg0, %c0_i32, %c0_i32_0 : i32, i32, i32
  }
  func.func @transform_5(%arg0: i32) -> (i32, i32, i32) {
    %c0_i32 = arith.constant 0 : i32
    %c0_i32_0 = arith.constant 0 : i32
    %c0_i32_1 = arith.constant 0 : i32
    return %arg0, %c0_i32, %c0_i32_0 : i32, i32, i32
  }
  func.func @transform_6(%arg0: i32) -> (i32, i32) {
    %c0_i32 = arith.constant 0 : i32
    %c0_i32_0 = arith.constant 0 : i32
    %c0_i32_1 = arith.constant 0 : i32
    return %c0_i32, %c0_i32_0 : i32, i32
  }
  func.func @transform_7(%arg0: i32) -> (i32, i32) {
    %c0_i32 = arith.constant 0 : i32
    %c0_i32_0 = arith.constant 0 : i32
    %c0_i32_1 = arith.constant 0 : i32
    return %c0_i32, %c0_i32_0 : i32, i32
  }
  func.func @transform_8(%arg0: i32) -> (i32, i32, i32) {
    %c0_i32 = arith.constant 0 : i32
    %c0_i32_0 = arith.constant 0 : i32
    %c0_i32_1 = arith.constant 0 : i32
    return %arg0, %c0_i32, %c0_i32_0 : i32, i32, i32
  }
  func.func @transform_9(%arg0: i32) -> (i32, i32, i32) {
    %c0_i32 = arith.constant 0 : i32
    %c0_i32_0 = arith.constant 0 : i32
    %c0_i32_1 = arith.constant 0 : i32
    return %arg0, %c0_i32, %c0_i32_0 : i32, i32, i32
  }
}

</mosaic_0001>

<bundles_post_ra>
// kernel: tile.23
= control target key start
LH: loop header
LB: loop body
LE: loop exit
PB: predicated region body
PF: predicated region fallthrough
CT: control target
= control target key end

     0   :  { %s22_s0 = inlined_call_operand.vmem [shape: f32[32], index: 0, kind: input, shape index: {}]   ;;  %s23_s1 = inlined_call_operand.vmem [shape: f32[4,32], index: 1, kind: output, shape index: {}]  }
   0x1   :  { %v4_v0 = vld [vmem:[%s22_s0] ss:$0 sm:$0xff] }
   0x2   :  { %5 = vst [vmem:[%s23_s1] sm:$0xf] %v4_v0 }

// kernel: tile.36
= control target key start
LH: loop header
LB: loop body
LE: loop exit
PB: predicated region body
PF: predicated region fallthrough
CT: control target
= control target key end

     0   :  { %vm7_vm0 = vcmask 261120   ;;  %s37_s8 = smov 32   ;;  %s38_s9 = smov 64   ;;  %vm13_vm1 = vcmask 1048320   ;;  %vm19_vm2 = vcmask 785920   ;;  %vm25_vm3 = vcmask 523520   ;;  %s55_s0 = inlined_call_operand.vmem [shape: f32[4,32], index: 0, kind: input, shape index: {}]   ;;  %s56_s1 = inlined_call_operand.vmem [shape: f32[1,1,128], index: 1, kind: output, shape index: {}]  }
   0x1   :  { %v4_v0 = vld [vmem:[%s55_s0] sm:$0xf]  ;;  %s36_s0 = smov 96  }
   0x2   :  { %5 = vst [vmem:[#allocation1] sm:$0xf] %v4_v0 }
   0x9   :  { %v10_v1 = vld [vmem:[#allocation1 + $0x3] sm:$0x1]   ;;  %v22_v2 = vld [vmem:[#allocation1 + $0x1] sm:$0x1]   ;;  %v6_v3 = vld [vmem:[#allocation1] sm:$0x1]  }
   0xa   :  { %11 = vrot.lane.b32.xlu0 %v10_v1, %s36_s0  ;;  %23 = vrot.lane.b32.xlu1 %v22_v2, %s37_s8  ;;  %v16_v4 = vld [vmem:[#allocation1 + $0x2] sm:$0x1]   ;;  %8 = vst.msk [vmem:[#allocation0] sm:$0x1] %vm7_vm0, %v6_v3  }
   0xe   :  { %17 = vrot.lane.b32.xlu0 %v16_v4, %s38_s9 }
  0x7c   :  { %v12_v5 = vpop.permute.xlu0 %11   ;;  %v24_v6 = vpop.permute.xlu1 %23  }
  0x7d   :  { %14 = vst.msk [vmem:[#allocation0] sm:$0x1] %vm13_vm1, %v12_v5  }
  0x80   :  { %v18_v7 = vpop.permute.xlu0 %17  }
  0x81   :  { %20 = vst.msk [vmem:[#allocation0] sm:$0x1] %vm19_vm2, %v18_v7  }
  0x82   :  { %26 = vst.msk [vmem:[#allocation0] sm:$0x1] %vm25_vm3, %v24_v6  }
  0x89   :  { %v30_v8 = vld [vmem:[#allocation0] sm:$0x1] }
  0x8a   :  { %32 = vst [vmem:[%s56_s1] sm:$0x1] %v30_v8 }

// kernel: tile.31
= control target key start
LH: loop header
LB: loop body
LE: loop exit
PB: predicated region body
PF: predicated region fallthrough
CT: control target
= control target key end

     0   :  { %s22_s0 = inlined_call_operand.vmem [shape: f32[16], index: 0, kind: input, shape index: {}]   ;;  %s23_s1 = inlined_call_operand.vmem [shape: f32[8,16], index: 1, kind: output, shape index: {}]  }
   0x1   :  { %v4_v0 = vld [vmem:[%s22_s0] ss:$0 sm:$0xff] }
   0x2   :  { %5 = vst [vmem:[%s23_s1] sm:$0xff] %v4_v0 }

// kernel: tile.37
= control target key start
LH: loop header
LB: loop body
LE: loop exit
PB: predicated region body
PF: predicated region fallthrough
CT: control target
= control target key end

     0   :  { %s67_s10 = smov 112   ;;  %s68_s11 = smov 80   ;;  %vm3_vm0 = vcmask 130048   ;;  %vm9_vm1 = vcmask 1048448   ;;  %vm15_vm2 = vcmask 917248   ;;  %vm21_vm3 = vcmask 786048   ;;  %s111_s0 = inlined_call_operand.vmem [shape: f32[8,16], index: 0, kind: input, shape index: {}]   ;;  %s112_s1 = inlined_call_operand.vmem [shape: f32[1,1,128], index: 1, kind: output, shape index: {}]  }
   0x1   :  { %v53_v0 = vld [vmem:[%s111_s0 + $0x7] sm:$0x1]   ;;  %v55_v1 = vld [vmem:[%s111_s0 + $0x5] sm:$0x1]   ;;  %v54_v2 = vld [vmem:[%s111_s0 + $0x6] sm:$0x1]  }
   0x2   :  { %7 = vrot.lane.b32.xlu0 %v53_v0, %s67_s10  ;;  %19 = vrot.lane.b32.xlu1 %v55_v1, %s68_s11  ;;  %v56_v3 = vld [vmem:[%s111_s0 + $0x4] sm:$0x1]   ;;  %v2_v4 = vld [vmem:[%s111_s0] sm:$0x1]   ;;  %s69_s18 = smov 96   ;;  %s70_s19 = smov 64  }
   0x3   :  { %4 = vst.msk [vmem:[#allocation0] sm:$0x1] %vm3_vm0, %v2_v4   ;;  %v57_v5 = vld [vmem:[%s111_s0 + $0x3] sm:$0x1]   ;;  %v58_v6 = vld [vmem:[%s111_s0 + $0x2] sm:$0x1]  }
   0x4   :  { %s71_s24 = smov 48   ;;  %s72_s25 = smov 32   ;;  %v59_v7 = vld [vmem:[%s111_s0 + $0x1] sm:$0x1]   ;;  %vm27_vm4 = vcmask 654848   ;;  %vm33_vm5 = vcmask 523648  }
   0x5   :  { %s73_s0 = smov 16   ;;  %vm39_vm6 = vcmask 392448   ;;  %vm45_vm7 = vcmask 261248  }
   0x6   :  { %13 = vrot.lane.b32.xlu0 %v54_v2, %s69_s18  ;;  %25 = vrot.lane.b32.xlu1 %v56_v3, %s70_s19 }
   0xa   :  { %31 = vrot.lane.b32.xlu0 %v57_v5, %s71_s24  ;;  %37 = vrot.lane.b32.xlu1 %v58_v6, %s72_s25 }
   0xe   :  { %43 = vrot.lane.b32.xlu0 %v59_v7, %s73_s0 }
  0x74   :  { %v8_v8 = vpop.permute.xlu0 %7   ;;  %v20_v9 = vpop.permute.xlu1 %19  }
  0x75   :  { %10 = vst.msk [vmem:[#allocation0] sm:$0x1] %vm9_vm1, %v8_v8  }
  0x78   :  { %v14_v10 = vpop.permute.xlu0 %13   ;;  %v26_v11 = vpop.permute.xlu1 %25  }
  0x79   :  { %16 = vst.msk [vmem:[#allocation0] sm:$0x1] %vm15_vm2, %v14_v10  }
  0x7a   :  { %22 = vst.msk [vmem:[#allocation0] sm:$0x1] %vm21_vm3, %v20_v9  }
  0x7b   :  { %28 = vst.msk [vmem:[#allocation0] sm:$0x1] %vm27_vm4, %v26_v11  }
  0x7c   :  { %v32_v12 = vpop.permute.xlu0 %31   ;;  %v38_v13 = vpop.permute.xlu1 %37  }
  0x7d   :  { %34 = vst.msk [vmem:[#allocation0] sm:$0x1] %vm33_vm5, %v32_v12  }
  0x7e   :  { %40 = vst.msk [vmem:[#allocation0] sm:$0x1] %vm39_vm6, %v38_v13  }
  0x80   :  { %v44_v14 = vpop.permute.xlu0 %43  }
  0x81   :  { %46 = vst.msk [vmem:[#allocation0] sm:$0x1] %vm45_vm7, %v44_v14  }
  0x88   :  { %v50_v15 = vld [vmem:[#allocation0] sm:$0x1] }
  0x89   :  { %52 = vst [vmem:[%s112_s1] sm:$0x1] %v50_v15 }

// kernel: fr_head_forward.2
= control target key start
LH: loop header
LB: loop body
LE: loop exit
PB: predicated region body
PF: predicated region fallthrough
CT: control target
= control target key end

     0   :  { %vm53_vm0 = vcmask 261120   ;;  %v634_v12 = vmov 0.0|0.0   ;;  %vm635_vm1 = vmmov 0   ;;  %v636_v25 = vmov 0.0   ;;  %s764_s1 = inlined_call_operand.vmem [shape: bf16[32,4], index: 1, kind: input, shape index: {}]   ;;  %s765_s2 = inlined_call_operand.vmem [shape: bf16[32,8], index: 2, kind: input, shape index: {}]   ;;  %s766_s0 = inlined_call_operand.vmem [shape: f32[1,32,32], index: 0, kind: input, shape index: {}]   ;;  %s767_s5 = inlined_call_operand.vmem [shape: f32[16,16], index: 5, kind: input, shape index: {}]   ;;  %s768_s3 = inlined_call_operand.vmem [shape: f32[16,32], index: 3, kind: input, shape index: {}]   ;;  %s769_s4 = inlined_call_operand.vmem [shape: f32[1,32], index: 4, kind: input, shape index: {}]   ;;  %s770_s6 = inlined_call_operand.vmem [shape: f32[1,16], index: 6, kind: input, shape index: {}]   ;;  %s771_s7 = inlined_call_operand.vmem [shape: bf16[1,8,32], index: 7, kind: output, shape index: {0}]   ;;  %s772_s8 = inlined_call_operand.vmem [shape: bf16[1,16,16], index: 8, kind: output, shape index: {1}]   ;;  %s773_s9 = inlined_call_operand.vmem [shape: f32[1,2,32], index: 9, kind: output, shape index: {2}]   ;;  %s774_s10 = inlined_call_operand.vmem [shape: f32[1,2,16], index: 10, kind: output, shape index: {3}]  }
   0x1   :  { %v630_v0 = vld [vmem:[%s764_s1] sm:$0xff]   ;;  %v632_v2 = vld [vmem:[%s764_s1 + $0x8] sm:$0xff]   ;;  %v33_v6 = vld [vmem:[%s766_s0 + $0x10] sm:$0xff]  ;;  %vm245_vm2 = vcmask 130048   ;;  %vm241_vm3 = vcmask 1043456   ;;  %vm487_vm4 = vcmask 257024  }
   0x2   :  { %v631_v1 = vld [vmem:[%s765_s2] sm:$0xff]   ;;  %590 = vmatprep.subr.bf16.mxu0 %v630_v0  ;;  %v633_v3 = vld [vmem:[%s765_s2 + $0x8] sm:$0xff]   ;;  %v34_v8 = vld [vmem:[%s766_s0 + $0x18] sm:$0xff]  ;;  %vm497_vm5 = vcmask 125952   ;;  %vm515_vm6 = vcmask 1040384   ;;  %vm517_vm7 = vcmask 254976  }
   0x3   :  { %598 = vmatprep.subr.bf16.mxu1 %v631_v1  ;;  %591 = vmatpush3.bf16.msra.mxu0 %v630_v0  ;;  %v31_v4 = vld [vmem:[%s766_s0] sm:$0xff]  ;;  %v32_v5 = vld [vmem:[%s766_s0 + $0x8] sm:$0xff]  ;;  %v36_v9 = vpack.c.bf16 %v34_v8, %v33_v6  ;;  %vm540_vm8 = vcmask 123904  }
   0x4   :  { %599 = vmatpush3.bf16.msra.mxu1 %v631_v1  ;;  %592 = vmatprep.subr.bf16.mxu0 %v632_v2  ;;  %v35_v7 = vpack.c.bf16 %v32_v5, %v31_v4  ;;  %v392_v10 = vld [vmem:[%s767_s5] sm:$0xff]  ;;  %v393_v11 = vld [vmem:[%s767_s5 + $0x8] sm:$0xff] }
   0x5   :  { %600 = vmatprep.subr.bf16.mxu1 %v633_v3  ;;  %v623_v13 = vpack.c.bf16 %v393_v11, %v392_v10  ;;  %v243_v22 = vld [vmem:[%s768_s3] sm:$0xff]  ;;  %v244_v23 = vld [vmem:[%s768_s3 + $0x8] sm:$0xff] }
   0x6   :  { %594 = vmatprep.mubr.msk.bf16.mxu0 %vm53_vm0, %v35_v7  ;;  %602 = vmatprep.mubr.msk.bf16.mxu1 %vm53_vm0, %v35_v7  ;;  %v621_v24 = vpack.c.bf16 %v244_v23, %v243_v22  ;;  %v567_v33 = vld [vmem:[%s769_s4] ss:$0 sm:$0xff] }
   0x7   :  { %593 = vmatpush3.bf16.msra.mxu0 %v632_v2  ;;  %v570_v36 = vld [vmem:[%s770_s6] ss:$0 sm:$0xff] }
   0x8   :  { %601 = vmatpush3.bf16.msra.mxu1 %v633_v3  ;;  %620 = vmatprep.subr.bf16.mxu0 %v634_v12 }
   0x9   :  { %624 = vmatprep.subr.bf16.mxu1 %v623_v13 }
   0xa   :  { %595 = vmatmul.mubr.msk.bf16.vlgmr.msra.gmra.mrb[0].mxu0 %vm53_vm0, %v36_v9 }
   0xb   :  { %603 = vmatmul.mubr.msk.bf16.vlgmr.msra.gmra.mrb[0].mxu1 %vm53_vm0, %v36_v9  ;;  %622 = vmatpush3.bf16.msra.mxu0 %v621_v24 }
   0xc   :  { %626 = vmatpush3.bf16.msra.mxu1 %v623_v13  ;;  %610 = vmatprep.mubr.msk.f32.mxu0 %vm635_vm1, %v636_v25 }
  0xdd   :  { %v596_v14 = vpop.f32.mrb[0].mxu0 }
  0xde   :  { %v604_v15 = vpop.f32.mrb[0].mxu1  ;;  %206 = vxpose.xlu1.b32.start [1/2] (short) (narrow) %v596_v14, 8  ;;  %v94_v16 = vpop.f32.mrb[1].mxu0 }
  0xdf   :  { %v159_v17 = vpop.f32.mrb[1].mxu1  ;;  %v597_v18 = vpop.f32.mrb[2].mxu0 }
  0xe0   :  { %328 = vxpose.xlu0.b32.start [1/2] (short) (narrow) %v159_v17, 8  ;;  %v605_v19 = vpop.f32.mrb[2].mxu1  ;;  %v97_v20 = vpop.f32.mrb[3].mxu0 }
  0xe1   :  { %v162_v21 = vpop.f32.mrb[3].mxu1 }
  0xe2   :  { %207 = vxpose.xlu1.b32.end [2/2] (short) (narrow) %v597_v18, 8 }
  0xe4   :  { %329 = vxpose.xlu0.b32.end [2/2] (short) (narrow) %v162_v21, 8 }
  0xe6   :  { %174 = vxpose.xlu1.b32.start [1/2] (short) (narrow) %v94_v16, 8 }
  0xe8   :  { %360 = vxpose.xlu0.b32.start [1/2] (short) (narrow) %v604_v15, 8 }
  0xea   :  { %175 = vxpose.xlu1.b32.end [2/2] (short) (narrow) %v97_v20, 8 }
  0xec   :  { %361 = vxpose.xlu0.b32.end [2/2] (short) (narrow) %v605_v19, 8 }
 0x15e   :  { %v222_v26 = vpop.trf.xlu1 }
 0x15f   :  { %v239_v28 = vrot.slane %v222_v26, 4 }
 0x160   :  { %v344_v27 = vpop.trf.xlu0 }
 0x161   :  { %617 = vmatprep.mubr.msk.f32.mxu1 %vm245_vm2, %v344_v27 }
 0x166   :  { %v190_v29 = vpop.trf.xlu1 }
 0x167   :  { %v242_v30 = vsel %vm241_vm3, %v190_v29, %v239_v28 }
 0x168   :  { %v376_v31 = vpop.trf.xlu0  ;;  %611 = vmatmul.mubr.msk.f32.vlgmr.msra.gmra.mrb[4].mxu0 %vm245_vm2, %v242_v30 }
 0x169   :  { %618 = vmatmul.mubr.msk.f32.vlgmr.msra.gmra.mrb[4].mxu1 %vm245_vm2, %v376_v31 }
 0x23b   :  { %v315_v32 = vpop.f32.mrb[4].mxu0 }
 0x23c   :  { %v319_v34 = vmul.f32 0.125, %v315_v32  ;;  %v619_v35 = vpop.f32.mrb[4].mxu1  ;;  %v612_v37 = vpop.f32.mrb[5].mxu0 }
 0x23d   :  { %v476_v38 = vmul.f32 0.25, %v619_v35  ;;  %v466_v39 = vpop.f32.mrb[5].mxu1 }
 0x23e   :  { %v327_v40 = vadd.f32 %v567_v33, %v319_v34  ;;  %v475_v41 = vmul.f32 0.25, %v466_v39 }
 0x23f   :  { %v485_v42 = vadd.f32 %v570_v36, %v476_v38 }
 0x240   :  { %v486_v43 = vpack.c.bf16 %v327_v40, %v327_v40  ;;  %v500_v44 = vsel %vm53_vm0, %v327_v40, 0.0  ;;  %v507_v45 = vmul.f32 %v327_v40, %v327_v40  ;;  %v484_v46 = vadd.f32 %v570_v36, %v475_v41 }
 0x241   :  { %v501_v47 = vrot.slane %v500_v44, 4  ;;  %v574_v48 = vpack.c.bf16 %v485_v42, %v485_v42  ;;  %v520_v49 = vsel %vm245_vm2, %v485_v42, 0.0  ;;  %v529_v50 = vmul.f32 %v485_v42, %v485_v42 }
 0x242   :  { %488 = vst.msk [vmem:[%s771_s7] sm:$0xf] %vm487_vm4, %v486_v43  ;;  %v508_v51 = vsel %vm53_vm0, %v507_v45, 0.0  ;;  %v573_v52 = vpack.c.bf16 %v484_v46, %v484_v46  ;;  %v519_v53 = vsel %vm245_vm2, %v484_v46, 0.0  ;;  %v528_v54 = vmul.f32 %v484_v46, %v484_v46 }
 0x243   :  { %v502_v55 = vadd.f32 %v501_v47, %v500_v44  ;;  %v509_v56 = vrot.slane %v508_v51, 4  ;;  %499 = vst.msk [vmem:[%s772_s8 + $0x4] sm:$0xf] %vm497_vm5, %v574_v48  ;;  %v531_v57 = vsel %vm245_vm2, %v529_v50, 0.0  ;;  %v521_v58 = vadd.f32 %v520_v49, %v519_v53 }
 0x244   :  { %498 = vst.msk [vmem:[%s772_s8] sm:$0xf] %vm497_vm5, %v573_v52  ;;  %v530_v59 = vsel %vm245_vm2, %v528_v54, 0.0 }
 0x245   :  { %v503_v60 = vrot.slane %v502_v55, 2  ;;  %v510_v61 = vadd.f32 %v509_v56, %v508_v51  ;;  %v522_v62 = vrot.slane %v521_v58, 4  ;;  %v532_v63 = vadd.f32 %v531_v57, %v530_v59 }
 0x247   :  { %v504_v0 = vadd.f32 %v503_v60, %v502_v55  ;;  %v511_v1 = vrot.slane %v510_v61, 2  ;;  %v523_v2 = vadd.f32 %v522_v62, %v521_v58  ;;  %v533_v3 = vrot.slane %v532_v63, 4 }
 0x249   :  { %v505_v4 = vrot.slane %v504_v0, 1  ;;  %v512_v5 = vadd.f32 %v511_v1, %v510_v61  ;;  %v524_v6 = vrot.slane %v523_v2, 2  ;;  %v534_v7 = vadd.f32 %v533_v3, %v532_v63 }
 0x24b   :  { %v513_v8 = vrot.slane %v512_v5, 1  ;;  %v525_v9 = vadd.f32 %v524_v6, %v523_v2  ;;  %v535_v10 = vrot.slane %v534_v7, 2  ;;  %v506_v11 = vadd.f32 %v505_v4, %v504_v0 }
 0x24d   :  { %v514_v12 = vadd.f32 %v513_v8, %v512_v5  ;;  %v526_v13 = vrot.slane %v525_v9, 1  ;;  %v536_v14 = vadd.f32 %v535_v10, %v534_v7 }
 0x24f   :  { %v516_v15 = vsel %vm515_vm6, %v506_v11, %v514_v12  ;;  %v537_v16 = vrot.slane %v536_v14, 1  ;;  %v527_v17 = vadd.f32 %v526_v13, %v525_v9 }
 0x250   :  { %518 = vst.msk [vmem:[%s773_s9] sm:$0x3] %vm517_vm7, %v516_v15 }
 0x251   :  { %v538_v18 = vadd.f32 %v537_v16, %v536_v14 }
 0x253   :  { %v539_v19 = vsel %vm515_vm6, %v527_v17, %v538_v18 }
 0x254   :  { %541 = vst.msk [vmem:[%s774_s10] sm:$0x3] %vm540_vm8, %v539_v19 }

// kernel: fr_head_forward.3
= control target key start
LH: loop header
LB: loop body
LE: loop exit
PB: predicated region body
PF: predicated region fallthrough
CT: control target
= control target key end

     0   :  { %s1738_s30 = smov 0   ;;  %s2342_s0 = inlined_call_operand.vmem [shape: bf16[2,2,128], index: 0, kind: input, shape index: {}]   ;;  %s2343_s1 = inlined_call_operand.vmem [shape: f32[2,1,128], index: 1, kind: input, shape index: {}]   ;;  %s2344_s2 = inlined_call_operand.vmem [shape: f32[2,1,128], index: 2, kind: input, shape index: {}]   ;;  %s2345_s3 = inlined_call_operand.vmem [shape: bf16[2,128,128], index: 3, kind: input, shape index: {}]   ;;  %s2346_s4 = inlined_call_operand.vmem [shape: f32[2,1,128], index: 4, kind: input, shape index: {}]   ;;  %s2347_s5 = inlined_call_operand.vmem [shape: f32[2,128,128], index: 5, kind: input, shape index: {}, may-alias: {5,9}]   ;;  %s2348_s6 = inlined_call_operand.vmem [shape: s32[2,1], index: 6, kind: input, shape index: {}]   ;;  %s2349_s7 = inlined_call_operand.vmem [shape: f32[2,128], index: 7, kind: input, shape index: {}]   ;;  %s2350_s8 = inlined_call_operand.vmem [shape: f32[2,2,1], index: 8, kind: output, shape index: {0}]   ;;  %s2351_s9 = inlined_call_operand.vmem [shape: f32[2,128,128], index: 9, kind: output, shape index: {1}, may-alias: {5,9}]  }
   0x1 LB: > { %s1484_s10 = sadd.s32 4294967295, %s1681_s30   ;;  %p1488_p0 = scmp.ge.s32.totalorder %s1681_s30, 1  ;;  %s1681_s30 = sphi %s1738_s30, %s20_s30  }
   0x2   : > { %p332_p1 = scmp.lt.s32.totalorder %s1681_s30, 3 }
   0x4   : > { %p333_p2 = pnand %p1488_p0, %p332_p1 }
   0x6   : > { %336 = sbr.rel (%p333_p2) target bundleno = 1397 (0x575), region = 52 }
   0xd   : > { %v421_v0 = vld [vmem:[%s2349_s7] sm:$0x3]  ;;  %vm425_vm0 = vcmask 1041408   ;;  %p389_p3 = scmp.lt.s32.totalorder %s1484_s10, 1  ;;  %v2352_v2 = vmov 0.0   ;;  %vm1684_vm1 = vmmov 0   ;;  %v422_v19 = vlaneseq }
   0xe   : > { %v426_v1 = vsel %vm425_vm0, %v421_v0, -inf  ;;  %1561 = vmatprep.subr.bf16.mxu0 %v2352_v2  ;;  %1577 = vmatprep.mubr.msk.bf16.mxu0 %vm1684_vm1, %v2352_v2  ;;  %v1685_v30 = vmov 0   ;;  %v449_v42 = vld [vmem:[%s2348_s6] sm:$0x3]  ;;  %vm656_vm4 = vcmask 15360   ;;  %vm681_vm8 = vcmask 1040384  }
   0xf   : > { %427 = vmax.xlane.f32.xlu0 %v426_v1  ;;  %s2398_s10 = smov (!%p389_p3, %s1484_s10), 1  ;;  %v1788_v20 = vand.u32 127, %v422_v19  ;;  %1633 = vset.pattern.permute.xlu1 %v1685_v30 }
  0x10   : > { %s1531_s13 = sshll.u32 %s2398_s10, 6  ;;  %s391_s19 = scalar_lea.vmem %s2342_s0, %s2398_s10  ;;  %723 = vmatprep.mubr.bf16.mxu1 %v1685_v30 }
  0x11   : > { %s1759_s16 = scalar_lea.vmem %s2345_s3, %s1531_s13  ;;  %v505_v7 = vld [vmem:[%s391_s19] sm:$0x1]  ;;  %s394_s22 = scalar_lea.vmem %s2343_s1, %s2398_s10  ;;  %2368 = vst [vmem:[#allocation2_spill] sm:$0xff] %v1788_v20 }
  0x12   : > { %v1635_v3 = vld [vmem:[%s1759_s16] sm:$0xff]   ;;  %v1636_v4 = vld [vmem:[%s1759_s16 + $0x8] sm:$0xff]   ;;  %v1637_v5 = vld [vmem:[%s1759_s16 + $0x10] sm:$0xff]   ;;  %v506_v8 = vunpack.c.l.bf16 %v505_v7  ;;  %s397_s25 = scalar_lea.vmem %s2344_s2, %s2398_s10  ;;  %s405_s28 = scalar_lea.vmem %s2346_s4, %s2398_s10 }
  0x13   : > { %1562 = vmatpush3.bf16.msra.mxu0 %v1635_v3  ;;  %v1638_v6 = vld [vmem:[%s1759_s16 + $0x18] sm:$0xff]   ;;  %v1639_v9 = vld [vmem:[%s1759_s16 + $0x20] sm:$0xff]   ;;  %v1640_v12 = vld [vmem:[%s1759_s16 + $0x28] sm:$0xff]   ;;  %s1532_s12 = sshll.u32 %s2398_s10, 7  ;;  %s1493_s19 = sshll.u32 %s2398_s10, 1 }
  0x14   : > { %1563 = vmatprep.subr.bf16.mxu0 %v2352_v2  ;;  %v1499_v10 = vld [vmem:[%s394_s22] ss:$0 sm:$0xff]  ;;  %v1641_v15 = vld [vmem:[%s1759_s16 + $0x30] sm:$0xff]   ;;  %v1642_v17 = vld [vmem:[%s1759_s16 + $0x38] sm:$0xff]   ;;  %s1873_s15 = scalar_lea.vmem %s2347_s5, %s1532_s12  ;;  %s1894_s18 = scalar_lea.vmem %s2351_s9, %s1532_s12 }
  0x15   : > { %v514_v11 = vmul.f32 %v1499_v10, %v506_v8  ;;  %v1500_v13 = vld [vmem:[%s397_s25] ss:$0 sm:$0xff]  ;;  %s414_s22 = scalar_lea.vmem %s2350_s8, %s1493_s19 }
  0x16   : > { %v1501_v31 = vld [vmem:[%s405_s28] ss:$0 sm:$0xff] }
  0x17   : > { %1564 = vmatpush3.bf16.msra.mxu0 %v1636_v4  ;;  %v522_v14 = vadd.f32 %v1500_v13, %v514_v11 }
  0x18   : > { %1565 = vmatprep.subr.bf16.mxu0 %v2352_v2 }
  0x19   : > { %v523_v16 = vmax.f32 %v522_v14, 0.0 }
  0x1b   : > { %1566 = vmatpush3.bf16.msra.mxu0 %v1637_v5  ;;  %v524_v18 = vpack.c.bf16 %v523_v16, %v523_v16 }
  0x1c   : > { %1567 = vmatprep.subr.bf16.mxu0 %v2352_v2 }
  0x1f   : > { %1568 = vmatpush3.bf16.msra.mxu0 %v1638_v6 }
  0x20   : > { %1569 = vmatprep.subr.bf16.mxu0 %v2352_v2 }
  0x23   : > { %1570 = vmatpush3.bf16.msra.mxu0 %v1639_v9 }
  0x24   : > { %1571 = vmatprep.subr.bf16.mxu0 %v2352_v2 }
  0x27   : > { %1572 = vmatpush3.bf16.msra.mxu0 %v1640_v12 }
  0x28   : > { %1573 = vmatprep.subr.bf16.mxu0 %v2352_v2 }
  0x2b   : > { %1574 = vmatpush3.bf16.msra.mxu0 %v1641_v15 }
  0x2c   : > { %1575 = vmatprep.subr.bf16.mxu0 %v2352_v2 }
  0x2f   : > { %1576 = vmatpush3.bf16.msra.mxu0 %v1642_v17 }
  0x32   : > { %1578 = vmatmul.mubr.bf16.vlgmr.msra.gmra.mrb[0].mxu0 %v524_v18 }
  0x9c   : > { %v428_v21 = vpop.xlane.xlu0 %427 }
  0x9d   : > { %vm429_vm2 = vcmp.eq.f32.partialorder %v421_v0, %v428_v21  ;;  %v456_v22 = vsub.f32 %v421_v0, %v428_v21 }
  0x9e   : > { %v430_v23 = vsel %vm429_vm2, %v1788_v20, 128 }
  0x9f   : > { %v457_v24 = vmul.f32 1.442695, %v456_v22  ;;  %v431_v25 = vsel %vm425_vm0, %v430_v23, 2147483647 }
  0xa0   : > { %v433_v26 = vshra.s32 %v431_v25, 16  ;;  %v432_v38 = vand.u32 65535, %v431_v25 }
  0xa1   : > { %1643 = vpow2.f32 %v457_v24 }
  0xa2   : > { %v435_v27 = vcvt.s32.f32 %v433_v26  ;;  %v434_v40 = vcvt.s32.f32 %v432_v38 }
  0xa4   : > { %436 = vmin.xlane.f32.xlu0 %v435_v27 }
  0xab   : > { %v1644_v28 = vpop.eup %1643 }
  0xac   : > { %v459_v29 = vsel %vm425_vm0, %v1644_v28, 0.0 }
  0xad   : > { %460 = vadd.xlane.f32.xlu0 %v459_v29 }
 0x105   : > { %v630_v32 = vpop.f32.mrb[0].mxu0 }
 0x106   : > { %v1799_v33 = vadd.f32 %v1501_v31, %v630_v32  ;;  %v1579_v34 = vpop.f32.mrb[1].mxu0 }
 0x107   : > { %v633_v35 = vpop.f32.mrb[2].mxu0 }
 0x108   : > { %2369 = vst [vmem:[#allocation3_spill] sm:$0xff] %v1799_v33  ;;  %v636_v36 = vpack.c.bf16 %v1799_v33, %v1799_v33  ;;  %v1580_v37 = vpop.f32.mrb[3].mxu0  ;;  %v1000_v43 = vmul.f32 %v1799_v33, %v1799_v33 }
 0x10a   : > { %640 = vxpose.xlu0.c.b16.start.end [1/1] (short) %v636_v36, 128  ;;  %v1001_v44 = vsel %vm425_vm0, %v1000_v43, 0.0 }
 0x113   : > { %1634 = vset.pattern.permute.xlu0 %v1685_v30 }
 0x131   : > { %v437_v39 = vpop.xlane.xlu0 %436 }
 0x132   : > { %vm438_vm3 = vcmp.eq.f32.partialorder %v435_v27, %v437_v39  ;;  %v443_v47 = vcvt.f32.s32 %v437_v39 }
 0x133   : > { %v439_v41 = vsel %vm438_vm3, %v434_v40, inf }
 0x134   : > { %440 = vmin.xlane.f32.xlu1 %v439_v41  ;;  %v444_v50 = vshll.u32 %v443_v47, 16  ;;  %v921_v47 = vld [vmem:[%s1873_s15 + $0x10] sm:$0xff] }
 0x13a   : > { %v461_v45 = vpop.xlane.xlu0 %460 }
 0x13b   : > { %1645 = vrcp.f32 %v461_v45 }
 0x145   : > { %451 = vperm.xlu1 %1633, %v449_v42   ;;  %v1646_v48 = vpop.eup %1645 }
 0x146   : > { %v1814_v51 = vmul.f32 %v1646_v48, %v1644_v28 }
 0x148   : > { %2370 = vst [vmem:[#allocation4_spill] sm:$0xff] %v1814_v51  ;;  %vm467_vm6 = vcmp.gt.f32.partialorder %v1814_v51, 0.0 }
 0x149   : > { %v1498_v59 = vsel %vm467_vm6, 1.0, %v2352_v2 }
 0x169   : > { %1002 = vadd.xlane.f32.xlu1 %v1001_v44 }
 0x170   : > { %v1810_v46 = vpop.trf.xlu0 }
 0x171   : > { %1583 = vmatprep.mubr.msk.bf16.mxu0 %vm656_vm4, %v1810_v46 }
 0x174   : > { %v1816_v53 = vpop.trf.xlu0 }
 0x178   : > { %v650_v60 = vpop.trf.xlu0 }
 0x17c   : > { %v651_v7 = vpop.trf.xlu0 }
 0x180   : > { %v652_v14 = vpop.trf.xlu0 }
 0x184   : > { %v653_v22 = vpop.trf.xlu0 }
 0x188   : > { %v654_v25 = vpop.trf.xlu0 }
 0x18c   : > { %v655_v27 = vpop.trf.xlu0 }
 0x1c1   : > { %v441_v49 = vpop.xlane.xlu1 %440 }
 0x1c2   : > { %v442_v52 = vcvt.f32.s32 %v441_v49 }
 0x1c4   : > { %v445_v54 = vadd.s32 %v444_v50, %v442_v52  ;;  %v919_v52 = vld [vmem:[%s1873_s15] sm:$0xff] }
 0x1c5   : > { %v452_v55 = vpop.permute.xlu1 %451 }
 0x1c6   : > { %vm446_vm5 = vcmp.eq.s32.totalorder %v1788_v20, %v445_v54  ;;  %vm453_vm7 = vcmp.eq.s32.totalorder %v1788_v20, %v452_v55  ;;  %v922_v55 = vld [vmem:[%s1873_s15 + $0x18] sm:$0xff] }
 0x1c7   : > { %v1496_v56 = vsel %vm446_vm5, 1.0, %v2352_v2  ;;  %v1823_v57 = vsel %vm453_vm7, 1.0, %v2352_v2 }
 0x1c8   : > { %2371 = vst [vmem:[#allocation5_spill] sm:$0xff] %v1823_v57  ;;  %v464_v58 = vmul.f32 %v1823_v57, %v1496_v56 }
 0x1ca   : > { %v1827_v61 = vmul.f32 %v1498_v59, %v464_v58  ;;  %v466_v62 = vsub.f32 %v1496_v56, %v464_v58  ;;  %v465_v63 = vsub.f32 %v1823_v57, %v464_v58 }
 0x1cc   : > { %2372 = vst [vmem:[#allocation6_spill] sm:$0xff] %v1827_v61  ;;  %v639_v0 = vpack.c.bf16 %v1827_v61, %v1827_v61  ;;  %v482_v1 = vand.u32 2147483647, %v466_v62  ;;  %v471_v3 = vand.u32 2147483647, %v465_v63  ;;  %v493_v36 = vsel %vm425_vm0, %v1827_v61, 0.0 }
 0x1cd   : > { %v494_v37 = vrot.slane %v493_v36, 4 }
 0x1ce   : > { %1619 = vmatprep.subr.msk.bf16.mxu0 %vm681_vm8, %v639_v0  ;;  %v689_v4 = vsel %vm681_vm8, %v639_v0, 0  ;;  %v483_v5 = vsel %vm425_vm0, %v482_v1, 0.0  ;;  %v472_v6 = vsel %vm425_vm0, %v471_v3, 0.0  ;;  %v925_v3 = vld [vmem:[%s1873_s15 + $0x30] sm:$0xff] }
 0x1cf   : > { %1582 = vmatpush3.bf16.msra.mxu0 %v689_v4  ;;  %v484_v8 = vrot.slane %v483_v5, 4  ;;  %v473_v9 = vrot.slane %v472_v6, 4  ;;  %v495_v38 = vadd.f32 %v494_v37, %v493_v36  ;;  %v923_v4 = vld [vmem:[%s1873_s15 + $0x20] sm:$0xff] }
 0x1d0   : > { %1599 = vmatprep.subr.bf16.mxu0 %v2352_v2 }
 0x1d1   : > { %v485_v10 = vadd.f32 %v484_v8, %v483_v5  ;;  %v474_v11 = vadd.f32 %v473_v9, %v472_v6  ;;  %v496_v39 = vrot.slane %v495_v38, 2  ;;  %v926_v5 = vld [vmem:[%s1873_s15 + $0x38] sm:$0xff]  ;;  %v924_v6 = vld [vmem:[%s1873_s15 + $0x28] sm:$0xff]  ;;  %v927_v8 = vld [vmem:[%s1873_s15 + $0x40] sm:$0xff] }
 0x1d2   : > { %1584 = vmatmul.mubr.msk.bf16.vlgmr.msra.gmra.mrb[4].mxu0 %vm656_vm4, %v1816_v53 }
 0x1d3   : > { %1587 = vmatprep.mubr.msk.bf16.mxu0 %vm656_vm4, %v650_v60  ;;  %v486_v12 = vrot.slane %v485_v10, 2  ;;  %v475_v13 = vrot.slane %v474_v11, 2  ;;  %v497_v40 = vadd.f32 %v496_v39, %v495_v38 }
 0x1d5   : > { %v487_v15 = vadd.f32 %v486_v12, %v485_v10  ;;  %v476_v16 = vadd.f32 %v475_v13, %v474_v11  ;;  %v498_v41 = vrot.slane %v497_v40, 1  ;;  %v1910_v12 = vld [vmem:[%s1873_s15 + $0x58] sm:$0xff]  ;;  %v1913_v13 = vld [vmem:[%s1873_s15 + $0x48] sm:$0xff] }
 0x1d7   : > { %v488_v17 = vrot.slane %v487_v15, 1  ;;  %v477_v18 = vrot.slane %v476_v16, 1  ;;  %v499_v42 = vadd.f32 %v498_v41, %v497_v40 }
 0x1d9   : > { %v489_v19 = vadd.f32 %v488_v17, %v487_v15  ;;  %v478_v21 = vadd.f32 %v477_v18, %v476_v16  ;;  %v901_v43 = vadd.f32 1e-12, %v499_v42  ;;  %vm500_vm9 = vcmp.gt.f32.partialorder %v499_v42, 1e-08  ;;  %v1923_v18 = vld [vmem:[%s1873_s15 + $0x60] sm:$0xff] }
 0x1da   : > { %1588 = vmatmul.mubr.msk.bf16.gmra.mrb[8].mxu0 %vm656_vm4, %v651_v7 }
 0x1db   : > { %1591 = vmatprep.mubr.msk.bf16.mxu0 %vm656_vm4, %v652_v14  ;;  %v490_v23 = vmax.f32 %v489_v19, 1e-12  ;;  %v479_v24 = vmax.f32 %v478_v21, 1e-12  ;;  %v1926_v19 = vld [vmem:[%s1873_s15 + $0x78] sm:$0xff]  ;;  %v1929_v21 = vld [vmem:[%s1873_s15 + $0x68] sm:$0xff] }
 0x1dd   : > { %1647 = vrcp.f32 %v490_v23 }
 0x1de   : > { %1649 = vrcp.f32 %v479_v24 }
 0x1df   : > { %1651 = vrcp.f32 %v901_v43 }
 0x1e2   : > { %1592 = vmatmul.mubr.msk.bf16.gmra.mrb[12].mxu0 %vm656_vm4, %v653_v22 }
 0x1e3   : > { %1595 = vmatprep.mubr.msk.bf16.mxu0 %vm656_vm4, %v654_v25 }
 0x1e7   : > { %v1648_v26 = vpop.eup %1647 }
 0x1e8   : > { %v1650_v28 = vpop.eup %1649  ;;  %v492_v29 = vmul.f32 %v1648_v26, %v466_v62  ;;  %v920_v62 = vld [vmem:[%s1873_s15 + $0x8] sm:$0xff] }
 0x1e9   : > { %v481_v31 = vmul.f32 %v1650_v28, %v465_v63  ;;  %v1877_v45 = vpop.eup %1651 }
 0x1ea   : > { %1596 = vmatmul.mubr.msk.bf16.gmra.mrb[16].mxu0 %vm656_vm4, %v655_v27  ;;  %v638_v32 = vpack.c.bf16 %v492_v29, %v492_v29 }
 0x1eb   : > { %v637_v34 = vpack.c.bf16 %v481_v31, %v481_v31  ;;  %1615 = vmatprep.mubr.msk.bf16.mxu0 %vm1684_vm1, %v2352_v2 }
 0x1ec   : > { %1510 = vmatprep.subr.msk.bf16.mxu1 %vm681_vm8, %v638_v32 }
 0x1ed   : > { %v683_v35 = vsel %vm681_vm8, %v637_v34, 0 }
 0x1ee   : > { %692 = vmatpush1.bf16.msra.mxu1 %v683_v35 }
 0x1f1   : > { %1511 = vmatmul.mubr.msk.bf16.vlgmr.msra.gmra.mrb[0].mxu1 %vm656_vm4, %v1810_v46 }
 0x1f2   : > { %733 = vmatprep.mubr.bf16.mxu1 %v1685_v30 }
 0x1f9   : > { %1512 = vmatmul.mubr.msk.bf16.gmra.mrb[4].mxu1 %vm656_vm4, %v1816_v53 }
 0x1fa   : > { %743 = vmatprep.mubr.bf16.mxu1 %v1685_v30 }
 0x201   : > { %1513 = vmatmul.mubr.msk.bf16.gmra.mrb[8].mxu1 %vm656_vm4, %v650_v60 }
 0x202   : > { %753 = vmatprep.mubr.bf16.mxu1 %v1685_v30 }
 0x209   : > { %1514 = vmatmul.mubr.msk.bf16.gmra.mrb[12].mxu1 %vm656_vm4, %v651_v7  ;;  %v929_v7 = vld [vmem:[%s1873_s15 + $0x50] sm:$0xff] }
 0x20a   : > { %763 = vmatprep.mubr.bf16.mxu1 %v1685_v30 }
 0x211   : > { %1515 = vmatmul.mubr.msk.bf16.gmra.mrb[16].mxu1 %vm656_vm4, %v652_v14  ;;  %v1916_v14 = vld [vmem:[%s1873_s15 + $0x70] sm:$0xff] }
 0x212   : > { %773 = vmatprep.mubr.bf16.mxu1 %v1685_v30 }
 0x219   : > { %1516 = vmatmul.mubr.msk.bf16.gmra.mrb[20].mxu1 %vm656_vm4, %v653_v22 }
 0x21a   : > { %783 = vmatprep.mubr.bf16.mxu1 %v1685_v30 }
 0x221   : > { %1517 = vmatmul.mubr.msk.bf16.gmra.mrb[24].mxu1 %vm656_vm4, %v654_v25 }
 0x222   : > { %793 = vmatprep.mubr.bf16.mxu1 %v1685_v30 }
 0x229   : > { %1518 = vmatmul.mubr.msk.bf16.gmra.mrb[28].mxu1 %vm656_vm4, %v655_v27 }
 0x22a   : > { %1251 = vmatprep.mubr.bf16.mxu1 %v1685_v30  ;;  %v1686_v30 = vmov 1.0  }
 0x22b   : > { %v1875_v44 = vsel %vm500_vm9, 0.9, %v1686_v30 }
 0x22c   : > { %v1881_v48 = vsub.f32 1.0, %v1875_v44  ;;  %v937_v56 = vmul.f32 %v921_v47, %v1875_v44  ;;  %v935_v63 = vmul.f32 %v919_v52, %v1875_v44  ;;  %v938_v10 = vmul.f32 %v922_v55, %v1875_v44 }
 0x22d   : > { %v936_v16 = vmul.f32 %v920_v62, %v1875_v44  ;;  %v941_v32 = vmul.f32 %v925_v3, %v1875_v44  ;;  %v939_v35 = vmul.f32 %v923_v4, %v1875_v44  ;;  %v942_v43 = vmul.f32 %v926_v5, %v1875_v44 }
 0x22e   : > { %v945_v3 = vmul.f32 %v929_v7, %v1875_v44  ;;  %v943_v5 = vmul.f32 %v927_v8, %v1875_v44  ;;  %v946_v7 = vmul.f32 %v1910_v12, %v1875_v44 }
 0x2a5   : > { %v1585_v46 = vpop.f32.mrb[4].mxu0 }
 0x2a6   : > { %v905_v49 = vmul.f32 %v1877_v45, %v1585_v46  ;;  %v838_v50 = vpop.f32.mrb[5].mxu0  ;;  %v940_v46 = vmul.f32 %v924_v6, %v1875_v44 }
 0x2a7   : > { %v903_v53 = vmul.f32 %v1877_v45, %v838_v50  ;;  %v1586_v54 = vpop.f32.mrb[6].mxu0 }
 0x2a8   : > { %v954_v58 = vmul.f32 %v1881_v48, %v905_v49  ;;  %v906_v59 = vmul.f32 %v1877_v45, %v1586_v54  ;;  %v841_v60 = vpop.f32.mrb[7].mxu0 }
 0x2a9   : > { %v952_v0 = vmul.f32 %v1881_v48, %v903_v53  ;;  %v904_v1 = vmul.f32 %v1877_v45, %v841_v60 }
 0x2aa   : > { %v1905_v9 = vadd.f32 %v954_v58, %v937_v56  ;;  %v955_v11 = vmul.f32 %v1881_v48, %v906_v59 }
 0x2ab   : > { %v1918_v15 = vadd.f32 %v952_v0, %v935_v63  ;;  %v953_v17 = vmul.f32 %v1881_v48, %v904_v1 }
 0x2ac   : > { %v1931_v22 = vadd.f32 %v955_v11, %v938_v10  ;;  %986 = vst [vmem:[%s1894_s18 + $0x10] sm:$0xff] %v1905_v9  ;;  %v1010_v38 = vmul.f32 %v1905_v9, %v1905_v9 }
 0x2ad   : > { %v1935_v23 = vadd.f32 %v953_v17, %v936_v16  ;;  %v1589_v24 = vpop.f32.mrb[8].mxu0  ;;  %984 = vst [vmem:[%s1894_s18] sm:$0xff] %v1918_v15  ;;  %v1008_v27 = vmul.f32 %v1918_v15, %v1918_v15 }
 0x2ae   : > { %v909_v25 = vmul.f32 %v1877_v45, %v1589_v24  ;;  %v854_v26 = vpop.f32.mrb[9].mxu0  ;;  %987 = vst [vmem:[%s1894_s18 + $0x18] sm:$0xff] %v1931_v22  ;;  %v1011_v47 = vmul.f32 %v1931_v22, %v1931_v22 }
 0x2af   : > { %v1009_v28 = vmul.f32 %v1935_v23, %v1935_v23  ;;  %v907_v29 = vmul.f32 %v1877_v45, %v854_v26  ;;  %v1590_v31 = vpop.f32.mrb[10].mxu0  ;;  %985 = vst [vmem:[%s1894_s18 + $0x8] sm:$0xff] %v1935_v23  ;;  %v944_v26 = vmul.f32 %v1913_v13, %v1875_v44 }
 0x2b0   : > { %v958_v34 = vmul.f32 %v1881_v48, %v909_v25  ;;  %v910_v36 = vmul.f32 %v1877_v45, %v1590_v31  ;;  %v857_v37 = vpop.f32.mrb[11].mxu0 }
 0x2b1   : > { %v1024_v39 = vadd.f32 %v1009_v28, %v1008_v27  ;;  %v956_v40 = vmul.f32 %v1881_v48, %v907_v29  ;;  %v908_v41 = vmul.f32 %v1877_v45, %v857_v37 }
 0x2b2   : > { %v1957_v42 = vadd.f32 %v958_v34, %v941_v32  ;;  %v959_v30 = vmul.f32 %v1881_v48, %v910_v36 }
 0x2b3   : > { %v1025_v49 = vadd.f32 %v1024_v39, %v1010_v38  ;;  %v1964_v50 = vadd.f32 %v956_v40, %v939_v35  ;;  %v957_v52 = vmul.f32 %v1881_v48, %v908_v41 }
 0x2b4   : > { %v1967_v53 = vadd.f32 %v959_v30, %v942_v43  ;;  %990 = vst [vmem:[%s1894_s18 + $0x30] sm:$0xff] %v1957_v42  ;;  %v1014_v11 = vmul.f32 %v1957_v42, %v1957_v42  ;;  %v949_v43 = vmul.f32 %v1916_v14, %v1875_v44  ;;  %v950_v14 = vmul.f32 %v1926_v19, %v1875_v44 }
 0x2b5   : > { %v1012_v54 = vmul.f32 %v1964_v50, %v1964_v50  ;;  %v1026_v55 = vadd.f32 %v1025_v49, %v1011_v47  ;;  %v1973_v56 = vadd.f32 %v957_v52, %v940_v46  ;;  %v1593_v58 = vpop.f32.mrb[12].mxu0  ;;  %988 = vst [vmem:[%s1894_s18 + $0x20] sm:$0xff] %v1964_v50  ;;  %v947_v46 = vmul.f32 %v1923_v18, %v1875_v44 }
 0x2b6   : > { %v913_v59 = vmul.f32 %v1877_v45, %v1593_v58  ;;  %v870_v60 = vpop.f32.mrb[13].mxu0  ;;  %991 = vst [vmem:[%s1894_s18 + $0x38] sm:$0xff] %v1967_v53  ;;  %v1015_v27 = vmul.f32 %v1967_v53, %v1967_v53 }
 0x2b7   : > { %v1027_v62 = vadd.f32 %v1026_v55, %v1012_v54  ;;  %v1013_v63 = vmul.f32 %v1973_v56, %v1973_v56  ;;  %v911_v0 = vmul.f32 %v1877_v45, %v870_v60  ;;  %v1594_v1 = vpop.f32.mrb[14].mxu0  ;;  %989 = vst [vmem:[%s1894_s18 + $0x28] sm:$0xff] %v1973_v56  ;;  %v948_v60 = vmul.f32 %v1929_v21, %v1875_v44 }
 0x2b8   : > { %v962_v4 = vmul.f32 %v1881_v48, %v913_v59  ;;  %v914_v6 = vmul.f32 %v1877_v45, %v1594_v1  ;;  %v873_v10 = vpop.f32.mrb[15].mxu0 }
 0x2b9   : > { %v1028_v16 = vadd.f32 %v1027_v62, %v1013_v63  ;;  %v960_v17 = vmul.f32 %v1881_v48, %v911_v0  ;;  %v912_v24 = vmul.f32 %v1877_v45, %v873_v10 }
 0x2ba   : > { %v1993_v25 = vadd.f32 %v962_v4, %v945_v3  ;;  %v963_v8 = vmul.f32 %v1881_v48, %v914_v6 }
 0x2bb   : > { %v1029_v28 = vadd.f32 %v1028_v16, %v1014_v11  ;;  %v2002_v29 = vadd.f32 %v960_v17, %v943_v5  ;;  %v961_v31 = vmul.f32 %v1881_v48, %v912_v24 }
 0x2bc   : > { %v2005_v32 = vadd.f32 %v963_v8, %v946_v7  ;;  %994 = vst [vmem:[%s1894_s18 + $0x50] sm:$0xff] %v1993_v25  ;;  %v1018_v52 = vmul.f32 %v1993_v25, %v1993_v25 }
 0x2bd   : > { %v1016_v12 = vmul.f32 %v2002_v29, %v2002_v29  ;;  %v1030_v34 = vadd.f32 %v1029_v28, %v1015_v27  ;;  %v2011_v35 = vadd.f32 %v961_v31, %v944_v26  ;;  %v1597_v13 = vpop.f32.mrb[16].mxu0  ;;  %992 = vst [vmem:[%s1894_s18 + $0x40] sm:$0xff] %v2002_v29 }
 0x2be   : > { %v917_v36 = vmul.f32 %v1877_v45, %v1597_v13  ;;  %v886_v37 = vpop.f32.mrb[17].mxu0  ;;  %995 = vst [vmem:[%s1894_s18 + $0x58] sm:$0xff] %v2005_v32  ;;  %v1019_v62 = vmul.f32 %v2005_v32, %v2005_v32 }
 0x2bf   : > { %v1031_v38 = vadd.f32 %v1030_v34, %v1016_v12  ;;  %v1017_v39 = vmul.f32 %v2011_v35, %v2011_v35  ;;  %v915_v40 = vmul.f32 %v1877_v45, %v886_v37  ;;  %v1598_v41 = vpop.f32.mrb[18].mxu0  ;;  %993 = vst [vmem:[%s1894_s18 + $0x48] sm:$0xff] %v2011_v35 }
 0x2c0   : > { %v966_v30 = vmul.f32 %v1881_v48, %v917_v36  ;;  %v918_v47 = vmul.f32 %v1877_v45, %v1598_v41  ;;  %v889_v49 = vpop.f32.mrb[19].mxu0 }
 0x2c1   : > { %v1032_v54 = vadd.f32 %v1031_v38, %v1017_v39  ;;  %v964_v55 = vmul.f32 %v1881_v48, %v915_v40  ;;  %v916_v58 = vmul.f32 %v1877_v45, %v889_v49 }
 0x2c2   : > { %v2033_v59 = vadd.f32 %v966_v30, %v949_v43  ;;  %v967_v18 = vmul.f32 %v1881_v48, %v918_v47 }
 0x2c3   : > { %v1033_v63 = vadd.f32 %v1032_v54, %v1018_v52  ;;  %v2042_v0 = vadd.f32 %v964_v55, %v947_v46  ;;  %v965_v45 = vmul.f32 %v1881_v48, %v916_v58 }
 0x2c4   : > { %v2045_v1 = vadd.f32 %v967_v18, %v950_v14  ;;  %998 = vst [vmem:[%s1894_s18 + $0x70] sm:$0xff] %v2033_v59  ;;  %v2049_v3 = vpop.f32.mrb[0].mxu1  ;;  %v1022_v7 = vmul.f32 %v2033_v59, %v2033_v59 }
 0x2c5   : > { %v1020_v19 = vmul.f32 %v2042_v0, %v2042_v0  ;;  %v1034_v4 = vadd.f32 %v1033_v63, %v1019_v62  ;;  %v2053_v44 = vadd.f32 %v965_v45, %v948_v60  ;;  %996 = vst [vmem:[%s1894_s18 + $0x60] sm:$0xff] %v2042_v0  ;;  %v2057_v21 = vpop.f32.mrb[1].mxu1  ;;  %v1070_v10 = vmul.f32 %v2049_v3, %v2049_v3 }
 0x2c6   : > { %999 = vst [vmem:[%s1894_s18 + $0x78] sm:$0xff] %v2045_v1  ;;  %v2061_v5 = vpop.f32.mrb[2].mxu1  ;;  %v1132_v17 = vmul.f32 %v2057_v21, %v2057_v21  ;;  %v1023_v28 = vmul.f32 %v2045_v1, %v2045_v1 }
 0x2c7   : > { %v1035_v48 = vadd.f32 %v1034_v4, %v1020_v19  ;;  %997 = vst [vmem:[%s1894_s18 + $0x68] sm:$0xff] %v2053_v44  ;;  %v1021_v6 = vmul.f32 %v2053_v44, %v2053_v44  ;;  %v1071_v11 = vmul.f32 %v2061_v5, %v2061_v5  ;;  %v2071_v16 = vpop.f32.mrb[3].mxu1 }
 0x2c8   : > { %v1133_v24 = vmul.f32 %v2071_v16, %v2071_v16 }
 0x2c9   : > { %v1036_v8 = vadd.f32 %v1035_v48, %v1021_v6  ;;  %v1086_v26 = vadd.f32 %v1071_v11, %v1070_v10 }
 0x2ca   : > { %v1148_v27 = vadd.f32 %v1133_v24, %v1132_v17 }
 0x2cb   : > { %v1037_v31 = vadd.f32 %v1036_v8, %v1022_v7 }
 0x2cc   : > { %v2081_v12 = vpop.f32.mrb[4].mxu1 }
 0x2cd   : > { %v1038_v34 = vadd.f32 %v1037_v31, %v1023_v28  ;;  %v1072_v13 = vmul.f32 %v2081_v12, %v2081_v12  ;;  %v2085_v36 = vpop.f32.mrb[5].mxu1 }
 0x2ce   : > { %v1134_v37 = vmul.f32 %v2085_v36, %v2085_v36  ;;  %v2089_v38 = vpop.f32.mrb[6].mxu1 }
 0x2cf   : > { %v1039_v39 = vrot.slane %v1038_v34, 4  ;;  %v1087_v40 = vadd.f32 %v1086_v26, %v1072_v13  ;;  %v1073_v41 = vmul.f32 %v2089_v38, %v2089_v38  ;;  %v2093_v43 = vpop.f32.mrb[7].mxu1 }
 0x2d0   : > { %v1149_v30 = vadd.f32 %v1148_v27, %v1134_v37  ;;  %v1135_v46 = vmul.f32 %v2093_v43, %v2093_v43 }
 0x2d1   : > { %v1040_v47 = vadd.f32 %v1039_v39, %v1038_v34  ;;  %v1088_v49 = vadd.f32 %v1087_v40, %v1073_v41 }
 0x2d2   : > { %v1150_v52 = vadd.f32 %v1149_v30, %v1135_v46 }
 0x2d3   : > { %v1041_v54 = vrot.slane %v1040_v47, 2 }
 0x2d4   : > { %v2097_v55 = vpop.f32.mrb[8].mxu1 }
 0x2d5   : > { %v1042_v58 = vadd.f32 %v1041_v54, %v1040_v47  ;;  %v1074_v14 = vmul.f32 %v2097_v55, %v2097_v55  ;;  %v2101_v18 = vpop.f32.mrb[9].mxu1 }
 0x2d6   : > { %v1136_v60 = vmul.f32 %v2101_v18, %v2101_v18  ;;  %v2105_v62 = vpop.f32.mrb[10].mxu1 }
 0x2d7   : > { %v1043_v63 = vrot.slane %v1042_v58, 1  ;;  %v1089_v45 = vadd.f32 %v1088_v49, %v1074_v14  ;;  %v1075_v19 = vmul.f32 %v2105_v62, %v2105_v62  ;;  %v2109_v4 = vpop.f32.mrb[11].mxu1 }
 0x2d8   : > { %v1151_v48 = vadd.f32 %v1150_v52, %v1136_v60  ;;  %v1137_v6 = vmul.f32 %v2109_v4, %v2109_v4 }
 0x2d9   : > { %v1044_v10 = vadd.f32 %v1043_v63, %v1042_v58  ;;  %v1090_v11 = vadd.f32 %v1089_v45, %v1075_v19 }
 0x2da   : > { %v1152_v17 = vadd.f32 %v1151_v48, %v1137_v6 }
 0x2db   : > { %1653 = vrsqrt.f32 %v1044_v10  ;;  %vm1047_vm10 = vcmp.eq.f32.partialorder %v1044_v10, inf  ;;  %v1050_v58 = vand.u32 2147483648, %v1044_v10  ;;  %vm1049_vm11 = vcmp.eq.f32.partialorder %v1044_v10, 0.0 }
 0x2dc   : > { %v2113_v24 = vpop.f32.mrb[12].mxu1 }
 0x2dd   : > { %v1076_v7 = vmul.f32 %v2113_v24, %v2113_v24  ;;  %v2117_v8 = vpop.f32.mrb[13].mxu1 }
 0x2de   : > { %v1138_v26 = vmul.f32 %v2117_v8, %v2117_v8  ;;  %v2121_v27 = vpop.f32.mrb[14].mxu1 }
 0x2df   : > { %v1091_v28 = vadd.f32 %v1090_v11, %v1076_v7  ;;  %v1077_v31 = vmul.f32 %v2121_v27, %v2121_v27  ;;  %v2125_v34 = vpop.f32.mrb[15].mxu1 }
 0x2e0   : > { %v1153_v13 = vadd.f32 %v1152_v17, %v1138_v26  ;;  %v1139_v37 = vmul.f32 %v2125_v34, %v2125_v34 }
 0x2e1   : > { %v1092_v39 = vadd.f32 %v1091_v28, %v1077_v31 }
 0x2e2   : > { %v1154_v40 = vadd.f32 %v1153_v13, %v1139_v37 }
 0x2e4   : > { %v2129_v41 = vpop.f32.mrb[16].mxu1 }
 0x2e5   : > { %v1654_v30 = vpop.eup %1653  ;;  %v1078_v46 = vmul.f32 %v2129_v41, %v2129_v41  ;;  %v2133_v47 = vpop.f32.mrb[17].mxu1 }
 0x2e6   : > { %v1046_v49 = vmul.f32 %v1654_v30, %v1044_v10  ;;  %v1140_v52 = vmul.f32 %v2133_v47, %v2133_v47  ;;  %v2137_v54 = vpop.f32.mrb[18].mxu1 }
 0x2e7   : > { %v1093_v14 = vadd.f32 %v1092_v39, %v1078_v46  ;;  %v1079_v60 = vmul.f32 %v2137_v54, %v2137_v54  ;;  %v2141_v63 = vpop.f32.mrb[19].mxu1 }
 0x2e8   : > { %v1048_v45 = vsel %vm1047_vm10, %v1044_v10, %v1046_v49  ;;  %v1155_v19 = vadd.f32 %v1154_v40, %v1140_v52  ;;  %v1141_v48 = vmul.f32 %v2141_v63, %v2141_v63 }
 0x2e9   : > { %v1051_v6 = vsel %vm1049_vm11, %v1050_v58, %v1048_v45  ;;  %v1094_v11 = vadd.f32 %v1093_v14, %v1079_v60 }
 0x2ea   : > { %v1052_v17 = vadd.f32 1e-12, %v1051_v6  ;;  %v1156_v7 = vadd.f32 %v1155_v19, %v1141_v48 }
 0x2ec   : > { %1655 = vrcp.f32 %v1052_v17  ;;  %v2145_v26 = vpop.f32.mrb[20].mxu1 }
 0x2ed   : > { %v1080_v28 = vmul.f32 %v2145_v26, %v2145_v26  ;;  %v2149_v31 = vpop.f32.mrb[21].mxu1 }
 0x2ee   : > { %v1142_v13 = vmul.f32 %v2149_v31, %v2149_v31  ;;  %v2153_v10 = vpop.f32.mrb[22].mxu1 }
 0x2ef   : > { %v1095_v37 = vadd.f32 %v1094_v11, %v1080_v28  ;;  %v1081_v39 = vmul.f32 %v2153_v10, %v2153_v10  ;;  %v2157_v40 = vpop.f32.mrb[23].mxu1 }
 0x2f0   : > { %v1157_v30 = vadd.f32 %v1156_v7, %v1142_v13  ;;  %v1143_v46 = vmul.f32 %v2157_v40, %v2157_v40 }
 0x2f1   : > { %v1096_v49 = vadd.f32 %v1095_v37, %v1081_v39 }
 0x2f2   : > { %v1158_v52 = vadd.f32 %v1157_v30, %v1143_v46 }
 0x2f4   : > { %v2161_v58 = vpop.f32.mrb[24].mxu1 }
 0x2f5   : > { %v1082_v14 = vmul.f32 %v2161_v58, %v2161_v58  ;;  %v2165_v60 = vpop.f32.mrb[25].mxu1 }
 0x2f6   : > { %2373 = vst [vmem:[#allocation7_spill] sm:$0xff] %v2165_v60  ;;  %v2167_v45 = vpop.eup %1655  ;;  %v1144_v19 = vmul.f32 %v2165_v60, %v2165_v60  ;;  %v2171_v48 = vpop.f32.mrb[26].mxu1 }
 0x2f7   : > { %v2175_v6 = vmul.f32 %v2167_v45, %v2053_v44  ;;  %v1097_v11 = vadd.f32 %v1096_v49, %v1082_v14  ;;  %v1083_v17 = vmul.f32 %v2171_v48, %v2171_v48  ;;  %v2179_v7 = vpop.f32.mrb[27].mxu1  ;;  %v2185_v30 = vmul.f32 %v2167_v45, %v2002_v29 }
 0x2f8   : > { %2374 = vst [vmem:[#allocation8_spill] sm:$0xff] %v2179_v7  ;;  %v1159_v28 = vadd.f32 %v1158_v52, %v1144_v19  ;;  %v1145_v13 = vmul.f32 %v2179_v7, %v2179_v7  ;;  %v2189_v44 = vmul.f32 %v2167_v45, %v2011_v35  ;;  %v2195_v49 = vmul.f32 %v2167_v45, %v1993_v25 }
 0x2f9   : > { %v1098_v37 = vadd.f32 %v1097_v11, %v1083_v17  ;;  %2375 = vst [vmem:[#allocation9_spill] sm:$0xff] %v2185_v30  ;;  %v2199_v52 = vmul.f32 %v2167_v45, %v2005_v32  ;;  %v2203_v14 = vmul.f32 %v2167_v45, %v2042_v0  ;;  %v2213_v25 = vmul.f32 %v2167_v45, %v2033_v59 }
 0x2fa   : > { %v1160_v39 = vadd.f32 %v1159_v28, %v1145_v13  ;;  %2376 = vst [vmem:[#allocation10_spill] sm:$0xff] %v2189_v44  ;;  %2377 = vst [vmem:[#allocation11_spill] sm:$0xff] %v2195_v49  ;;  %v2217_v32 = vmul.f32 %v2167_v45, %v2045_v1 }
 0x2fb   : > { %2378 = vst [vmem:[#allocation12_spill] sm:$0xff] %v2199_v52  ;;  %2379 = vst [vmem:[#allocation13_spill] sm:$0xff] %v2203_v14 }
 0x2fc   : > { %v2191_v46 = vpop.f32.mrb[28].mxu1 }
 0x2fd   : > { %v1084_v29 = vmul.f32 %v2191_v46, %v2191_v46  ;;  %v2207_v19 = vpop.f32.mrb[29].mxu1 }
 0x2fe   : > { %v1146_v0 = vmul.f32 %v2207_v19, %v2207_v19  ;;  %v799_v11 = vpop.f32.mrb[30].mxu1 }
 0x2ff   : > { %v1099_v13 = vadd.f32 %v1098_v37, %v1084_v29  ;;  %v1085_v35 = vmul.f32 %v799_v11, %v799_v11  ;;  %v801_v2 = vpop.f32.mrb[31].mxu1 }
 0x300   : > { %v1161_v57 = vadd.f32 %v1160_v39, %v1146_v0  ;;  %v1147_v20 = vmul.f32 %v801_v2, %v801_v2  ;;  %v2237_v0 = vmul.f32 %v2167_v45, %v1964_v50 }
 0x301   : > { %v1100_v1 = vadd.f32 %v1099_v13, %v1085_v35 }
 0x302   : > { %v1162_v61 = vadd.f32 %v1161_v57, %v1147_v20 }
 0x303   : > { %v1101_v51 = vrot.slane %v1100_v1, 4 }
 0x304   : > { %v1163_v33 = vrot.slane %v1162_v61, 4 }
 0x305   : > { %v1102_v30 = vadd.f32 %v1101_v51, %v1100_v1 }
 0x306   : > { %v1164_v44 = vadd.f32 %v1163_v33, %v1162_v61 }
 0x307   : > { %v1103_v7 = vrot.slane %v1102_v30, 2 }
 0x308   : > { %v1165_v60 = vrot.slane %v1164_v44, 2 }
 0x309   : > { %v1104_v17 = vadd.f32 %v1103_v7, %v1102_v30 }
 0x30a   : > { %v1166_v49 = vadd.f32 %v1165_v60, %v1164_v44  ;;  %v1054_v44 = vmul.f32 %v2167_v45, %v1918_v15 }
 0x30b   : > { %v1105_v52 = vrot.slane %v1104_v17, 1 }
 0x30c   : > { %v1167_v28 = vrot.slane %v1166_v49, 1 }
 0x30d   : > { %v1106_v37 = vadd.f32 %v1105_v52, %v1104_v17  ;;  %v1056_v52 = vmul.f32 %v2167_v45, %v1905_v9  ;;  %v2241_v17 = vmul.f32 %v2167_v45, %v1973_v56  ;;  %v2247_v9 = vmul.f32 %v2167_v45, %v1957_v42 }
 0x30e   : > { %v1168_v29 = vadd.f32 %v1167_v28, %v1166_v49  ;;  %v1055_v49 = vmul.f32 %v2167_v45, %v1935_v23 }
 0x30f   : > { %1657 = vrsqrt.f32 %v1106_v37  ;;  %vm1109_vm12 = vcmp.eq.f32.partialorder %v1106_v37, inf  ;;  %v1112_v35 = vand.u32 2147483648, %v1106_v37  ;;  %vm1111_vm13 = vcmp.eq.f32.partialorder %v1106_v37, 0.0 }
 0x310   : > { %1659 = vrsqrt.f32 %v1168_v29  ;;  %vm1171_vm14 = vcmp.eq.f32.partialorder %v1168_v29, inf  ;;  %v1174_v33 = vand.u32 2147483648, %v1168_v29  ;;  %vm1173_vm15 = vcmp.eq.f32.partialorder %v1168_v29, 0.0 }
 0x311   : > { %v1195_v28 = vpack.c.bf16 %v1055_v49, %v1054_v44  ;;  %v1201_v23 = vpack.c.bf16 %v2241_v17, %v2237_v0 }
 0x319   : > { %v1658_v14 = vpop.eup %1657 }
 0x31a   : > { %v1660_v59 = vpop.eup %1659  ;;  %v1108_v39 = vmul.f32 %v1658_v14, %v1106_v37  ;;  %v1057_v14 = vmul.f32 %v2167_v45, %v1931_v22  ;;  %v2251_v22 = vmul.f32 %v2167_v45, %v1967_v53 }
 0x31b   : > { %v1170_v20 = vmul.f32 %v1660_v59, %v1168_v29 }
 0x31c   : > { %v1110_v57 = vsel %vm1109_vm12, %v1106_v37, %v1108_v39  ;;  %v1198_v15 = vpack.c.bf16 %v1057_v14, %v1056_v52  ;;  %v2381_v14 = vld [vmem:[#allocation7_spill] sm:$0xff] }
 0x31d   : > { %v1113_v51 = vsel %vm1111_vm13, %v1112_v35, %v1110_v57  ;;  %v1172_v61 = vsel %vm1171_vm14, %v1168_v29, %v1170_v20 }
 0x31e   : > { %v1114_v60 = vadd.f32 1e-12, %v1113_v51  ;;  %v1175_v7 = vsel %vm1173_vm15, %v1174_v33, %v1172_v61  ;;  %v1003_v51 = vpop.xlane.xlu1 %1002 }
 0x31f   : > { %v1176_v30 = vadd.f32 1e-12, %v1175_v7  ;;  %v1004_v49 = vmax.f32 %v1003_v51, 1e-24 }
 0x320   : > { %1661 = vrcp.f32 %v1114_v60 }
 0x321   : > { %1663 = vrcp.f32 %v1176_v30 }
 0x322   : > { %1665 = vrsqrt.f32 %v1004_v49 }
 0x32a   : > { %v1662_v13 = vpop.eup %1661 }
 0x32b   : > { %v1664_v50 = vpop.eup %1663  ;;  %v2254_v59 = vmul.f32 %v1662_v13, %v2191_v46  ;;  %v2256_v56 = vmul.f32 %v1662_v13, %v799_v11  ;;  %v1116_v1 = vmul.f32 %v1662_v13, %v2049_v3  ;;  %v1117_v37 = vmul.f32 %v1662_v13, %v2061_v5 }
 0x32c   : > { %v2261_v29 = vmul.f32 %v1664_v50, %v2207_v19  ;;  %v2263_v39 = vmul.f32 %v1664_v50, %v801_v2  ;;  %v1178_v42 = vmul.f32 %v1664_v50, %v2057_v21  ;;  %v1179_v53 = vmul.f32 %v1664_v50, %v2071_v16 }
 0x32d   : > { %v1217_v45 = vpack.c.bf16 %v2256_v56, %v2254_v59  ;;  %v1196_v46 = vpack.c.bf16 %v1117_v37, %v1116_v1  ;;  %v1118_v11 = vmul.f32 %v1662_v13, %v2081_v12  ;;  %v1119_v35 = vmul.f32 %v1662_v13, %v2089_v38  ;;  %v2387_v1 = vld [vmem:[#allocation11_spill] sm:$0xff] }
 0x32e   : > { %v1218_v3 = vpack.c.bf16 %v2263_v39, %v2261_v29  ;;  %v1197_v5 = vpack.c.bf16 %v1179_v53, %v1178_v42  ;;  %v1180_v19 = vmul.f32 %v1664_v50, %v2085_v36  ;;  %v1181_v2 = vmul.f32 %v1664_v50, %v2093_v43  ;;  %v2390_v42 = vld [vmem:[#allocation13_spill] sm:$0xff]  ;;  %v2394_v39 = vld [vmem:[#allocation6_spill] sm:$0xff] }
 0x32f   : > { %1219 = vmatprep.subr.bf16.mxu1 %v1196_v46  ;;  %v1199_v21 = vpack.c.bf16 %v1119_v35, %v1118_v11  ;;  %v1120_v16 = vmul.f32 %v1662_v13, %v2097_v55  ;;  %v1121_v20 = vmul.f32 %v1662_v13, %v2105_v62  ;;  %v1182_v57 = vmul.f32 %v1664_v50, %v2101_v18 }
 0x330   : > { %1220 = vmatpush1.bf16.msra.mxu1 %v1195_v28  ;;  %1600 = vmatpush3.bf16.msra.mxu0 %v1197_v5  ;;  %v1200_v12 = vpack.c.bf16 %v1181_v2, %v1180_v19  ;;  %v1183_v38 = vmul.f32 %v1664_v50, %v2109_v4  ;;  %v1122_v33 = vmul.f32 %v1662_v13, %v2113_v24  ;;  %v2380_v36 = vmov 0.0   ;;  %v2382_v28 = vld [vmem:[#allocation8_spill] sm:$0xff] }
 0x331   : > { %1221 = vmatprep.subr.bf16.mxu1 %v1199_v21  ;;  %1601 = vmatprep.subr.bf16.mxu0 %v2380_v36  ;;  %v1202_v43 = vpack.c.bf16 %v1121_v20, %v1120_v16  ;;  %v1123_v61 = vmul.f32 %v1662_v13, %v2121_v27  ;;  %v1184_v55 = vmul.f32 %v1664_v50, %v2117_v8 }
 0x332   : > { %v1203_v60 = vpack.c.bf16 %v1183_v38, %v1182_v57  ;;  %v1185_v62 = vmul.f32 %v1664_v50, %v2125_v34  ;;  %v1124_v18 = vmul.f32 %v1662_v13, %v2129_v41  ;;  %v1125_v7 = vmul.f32 %v1662_v13, %v2137_v54 }
 0x333   : > { %v1205_v30 = vpack.c.bf16 %v1123_v61, %v1122_v33  ;;  %v1186_v4 = vmul.f32 %v1664_v50, %v2133_v47  ;;  %v1187_v24 = vmul.f32 %v1664_v50, %v2141_v63  ;;  %v1126_v44 = vmul.f32 %v1662_v13, %v2145_v26  ;;  %v2395_v33 = vld [vmem:[#allocation2_spill] sm:$0xff] }
 0x334   : > { %1222 = vmatpush1.bf16.msra.mxu1 %v1198_v15  ;;  %1602 = vmatpush3.bf16.msra.mxu0 %v1200_v12  ;;  %v1206_v27 = vpack.c.bf16 %v1185_v62, %v1184_v55  ;;  %v1208_v52 = vpack.c.bf16 %v1125_v7, %v1124_v18  ;;  %v1127_v8 = vmul.f32 %v1662_v13, %v2153_v10  ;;  %vm424_vm1 = vcmp.lt.s32.totalorder %v2395_v33, 10 }
 0x335   : > { %1223 = vmatprep.subr.bf16.mxu1 %v1202_v43  ;;  %1603 = vmatprep.subr.bf16.mxu0 %v2380_v36  ;;  %v1209_v34 = vpack.c.bf16 %v1187_v24, %v1186_v4  ;;  %v1188_v41 = vmul.f32 %v1664_v50, %v2149_v31  ;;  %v1189_v54 = vmul.f32 %v1664_v50, %v2157_v40  ;;  %v1687_v61 = vmov -1e+30  }
 0x336   : > { %v1211_v47 = vpack.c.bf16 %v1127_v8, %v1126_v44  ;;  %v1128_v63 = vmul.f32 %v1662_v13, %v2161_v58  ;;  %v1129_v26 = vmul.f32 %v1662_v13, %v2171_v48  ;;  %v1190_v0 = vmul.f32 %v1664_v50, %v2381_v14  ;;  %v2383_v58 = vld [vmem:[#allocation10_spill] sm:$0xff]  ;;  %v2384_v48 = vld [vmem:[#allocation9_spill] sm:$0xff] }
 0x337   : > { %v1212_v17 = vpack.c.bf16 %v1189_v54, %v1188_v41  ;;  %v1191_v15 = vmul.f32 %v1664_v50, %v2382_v28  ;;  %v1204_v40 = vpack.c.bf16 %v2251_v22, %v2247_v9  ;;  %v2385_v13 = vpack.c.bf16 %v2383_v58, %v2384_v48  ;;  %v2386_v50 = vld [vmem:[#allocation12_spill] sm:$0xff]  ;;  %v2389_v9 = vld [vmem:[#allocation3_spill] sm:$0xff] }
 0x338   : > { %1224 = vmatpush1.bf16.msra.mxu1 %v1201_v23  ;;  %1604 = vmatpush3.bf16.msra.mxu0 %v1203_v60  ;;  %v1214_v10 = vpack.c.bf16 %v1129_v26, %v1128_v63  ;;  %v1666_v23 = vpop.eup %1665  ;;  %v2388_v37 = vpack.c.bf16 %v2386_v50, %v2387_v1  ;;  %v2391_v53 = vpack.c.bf16 %v2175_v6, %v2390_v42  ;;  %v2393_v6 = vld [vmem:[#allocation4_spill] sm:$0xff]  ;;  %v504_v55 = vsel %vm424_vm1, 0.0, %v1687_v61  ;;  %v2396_v63 = vld [vmem:[#allocation5_spill] sm:$0xff] }
 0x339   : > { %1225 = vmatprep.subr.bf16.mxu1 %v1205_v30  ;;  %1605 = vmatprep.subr.bf16.mxu0 %v2380_v36  ;;  %v1215_v31 = vpack.c.bf16 %v1191_v15, %v1190_v0  ;;  %v1006_v22 = vmul.f32 %v1666_v23, %v2389_v9  ;;  %v2392_v11 = vpack.c.bf16 %v2217_v32, %v2213_v25  ;;  %v502_v5 = vsub.f32 1.0, %v2393_v6 }
 0x33b   : > { %v1007_v46 = vadd.f32 0.1, %v1006_v22  ;;  %v503_v21 = vmul.f32 0.125, %v502_v5 }
 0x33c   : > { %1226 = vmatpush1.bf16.msra.mxu1 %v1204_v40  ;;  %1606 = vmatpush3.bf16.msra.mxu0 %v1206_v27 }
 0x33d   : > { %1227 = vmatprep.subr.bf16.mxu1 %v1208_v52  ;;  %1607 = vmatprep.subr.bf16.mxu0 %v2380_v36  ;;  %v1194_v35 = vpack.c.bf16 %v1007_v46, %v1007_v46 }
 0x340   : > { %1228 = vmatpush1.bf16.msra.mxu1 %v2385_v13  ;;  %1608 = vmatpush3.bf16.msra.mxu0 %v1209_v34 }
 0x341   : > { %1229 = vmatprep.subr.bf16.mxu1 %v1211_v47  ;;  %1609 = vmatprep.subr.bf16.mxu0 %v2380_v36 }
 0x344   : > { %1230 = vmatpush1.bf16.msra.mxu1 %v2388_v37  ;;  %1610 = vmatpush3.bf16.msra.mxu0 %v1212_v17 }
 0x345   : > { %1231 = vmatprep.subr.bf16.mxu1 %v1214_v10  ;;  %1611 = vmatprep.subr.bf16.mxu0 %v2380_v36 }
 0x348   : > { %1232 = vmatpush1.bf16.msra.mxu1 %v2391_v53  ;;  %1612 = vmatpush3.bf16.msra.mxu0 %v1215_v31 }
 0x349   : > { %1233 = vmatprep.subr.bf16.mxu1 %v1217_v45  ;;  %1613 = vmatprep.subr.bf16.mxu0 %v2380_v36 }
 0x34c   : > { %1234 = vmatpush1.bf16.msra.mxu1 %v2392_v11  ;;  %1614 = vmatpush3.bf16.msra.mxu0 %v1218_v3 }
 0x34f   : > { %1252 = vmatmul.mubr.bf16.vlgmr.msra.gmra.mrb[32].mxu1 %v1194_v35  ;;  %1616 = vmatmul.mubr.bf16.vlgmr.msra.gmra.mrb[20].mxu0 %v1194_v35 }
 0x422   : > { %v1253_v19 = vpop.f32.mrb[32].mxu1  ;;  %v1294_v2 = vpop.f32.mrb[20].mxu0 }
 0x423   : > { %v1301_v59 = vsub.f32 0.0, %v1294_v2  ;;  %v1255_v56 = vpop.f32.mrb[33].mxu1  ;;  %v1617_v45 = vpop.f32.mrb[21].mxu0 }
 0x424   : > { %v1527_v16 = vadd.f32 -1.0, %v1255_v56  ;;  %v1257_v20 = vpop.f32.mrb[34].mxu1  ;;  %v1297_v57 = vpop.f32.mrb[22].mxu0 }
 0x425   : > { %v1528_v25 = vadd.f32 -1.0, %v1301_v59  ;;  %v1258_v32 = vpop.f32.mrb[35].mxu1  ;;  %v1618_v12 = vpop.f32.mrb[23].mxu0 }
 0x426   : > { %v1303_v38 = vmul.f32 %v1527_v16, %v503_v21 }
 0x427   : > { %v1308_v29 = vmul.f32 %v1528_v25, %v503_v21 }
 0x428   : > { %v1304_v3 = vmul.f32 %v1303_v38, %v2394_v39 }
 0x429   : > { %v1309_v51 = vmul.f32 %v1308_v29, %v2394_v39 }
 0x42a   : > { %v1305_v36 = vadd.f32 %v1304_v3, %v1253_v19 }
 0x42b   : > { %v1310_v43 = vadd.f32 %v1309_v51, %v1253_v19 }
 0x42c   : > { %v1306_v60 = vmul.f32 8.0, %v1305_v36 }
 0x42d   : > { %v1311_v62 = vmul.f32 8.0, %v1310_v43 }
 0x42e   : > { %v1307_v18 = vadd.f32 %v1306_v60, %v504_v55 }
 0x42f   : > { %v1312_v7 = vadd.f32 %v1311_v62, %v504_v55 }
 0x430   : > { %v1313_v30 = vsel %vm425_vm0, %v1307_v18, -inf  ;;  %v1325_v26 = vmul.f32 %v2396_v63, %v1307_v18 }
 0x431   : > { %1314 = vmax.xlane.f32.xlu0 %v1313_v30  ;;  %v1330_v4 = vsel %vm425_vm0, %v1312_v7, -inf  ;;  %v1342_v0 = vmul.f32 %v2396_v63, %v1312_v7 }
 0x432   : > { %1331 = vmax.xlane.f32.xlu1 %v1330_v4  ;;  %v1326_v14 = vsel %vm425_vm0, %v1325_v26, 0.0 }
 0x433   : > { %v1343_v17 = vsel %vm425_vm0, %v1342_v0, 0.0 }
 0x4be   : > { %v1315_v24 = vpop.xlane.xlu0 %1314 }
 0x4bf   : > { %v1316_v44 = vsub.f32 %v1307_v18, %v1315_v24  ;;  %v1332_v49 = vpop.xlane.xlu1 %1331 }
 0x4c0   : > { %v1333_v27 = vsub.f32 %v1312_v7, %v1332_v49 }
 0x4c1   : > { %v1317_v52 = vmul.f32 1.442695, %v1316_v44 }
 0x4c2   : > { %v1334_v8 = vmul.f32 1.442695, %v1333_v27 }
 0x4c3   : > { %1667 = vpow2.f32 %v1317_v52 }
 0x4c4   : > { %1669 = vpow2.f32 %v1334_v8 }
 0x4cd   : > { %v1668_v34 = vpop.eup %1667 }
 0x4ce   : > { %v1319_v41 = vsel %vm425_vm0, %v1668_v34, 0.0  ;;  %v1670_v54 = vpop.eup %1669 }
 0x4cf   : > { %1320 = vadd.xlane.f32.xlu1 %v1319_v41  ;;  %v1336_v47 = vsel %vm425_vm0, %v1670_v54, 0.0  ;;  %vm1348_vm0 = vcmask 1024  }
 0x4d3   : > { %1337 = vadd.xlane.f32.xlu1 %v1336_v47 }
 0x4d7   : > { %1327 = vadd.xlane.f32.xlu1 %v1326_v14 }
 0x4db   : > { %1344 = vadd.xlane.f32.xlu1 %v1343_v17 }
 0x55c   : > { %v1321_v28 = vpop.xlane.xlu1 %1320 }
 0x55d   : > { %1671 = vlog2.f32 %v1321_v28 }
 0x560   : > { %v1338_v15 = vpop.xlane.xlu1 %1337 }
 0x561   : > { %1673 = vlog2.f32 %v1338_v15 }
 0x564   : > { %v1328_v40 = vpop.xlane.xlu1 %1327 }
 0x567   : > { %v1672_v10 = vpop.eup %1671 }
 0x568   : > { %v1323_v31 = vmul.f32 0.6931472, %v1672_v10  ;;  %v1345_v50 = vpop.xlane.xlu1 %1344 }
 0x56a   : > { %v1324_v13 = vadd.f32 %v1323_v31, %v1315_v24 }
 0x56b   : > { %v1674_v58 = vpop.eup %1673 }
 0x56c   : > { %v1340_v48 = vmul.f32 0.6931472, %v1674_v58  ;;  %v1329_v1 = vsub.f32 %v1324_v13, %v1328_v40 }
 0x56e   : > { %v1341_v23 = vadd.f32 %v1340_v48, %v1332_v49 }
 0x570   : > { %v1346_v37 = vsub.f32 %v1341_v23, %v1345_v50 }
 0x572   : > { %v1347_v9 = vadd.f32 %v1346_v37, %v1329_v1 }
 0x574   : > { %1349 = vst.msk [vmem:[%s414_s22] sm:$0x3] %vm1348_vm0, %v1347_v9 }
 0x575 PF: > { %s20_s30 = sadd.s32 1, %s1681_s30  }
 0x576   : > { %p17_p4 = scmp.ge.s32.totalorder %s20_s30, 4  }
 0x578   :  { %19 = sbr.rel (!%p17_p4) target bundleno = 1 (0x1), region = 109 }

</bundles_post_ra>
